<compile_context>
chip_gen: v6e
topology: v6e:2x2x1
jax: 0.10.0
libtpu: 0.0.40
codegen_flags: <defaults>
</compile_context>

<pallas_src>
import functools

import jax
import jax.numpy as jnp
from jax import lax
from jax.experimental import pallas as pl
from jax.experimental.pallas import tpu as pltpu

HIDDEN = 300          # logical hidden width (matches the PyTorch module)
H_PAD = 384           # 3 x 128: lane-friendly padded hidden width
C_PAD = 128           # lane-dense padded class width
BN_EPS = 1e-5
NEG_BIG = -1e30       # masks padded logit lanes out of the softmax


def _round_up(x, m):
    return ((x + m - 1) // m) * m


def mlp_kernel(n_classes,
               x_ref,
               w1_ref, b1_ref,
               w2_ref, b2_ref,
               w3_ref, b3_ref,
               w4_ref, b4_ref,
               o_ref):
    """One batch-row tile of the full MLP forward (BN already folded into W/b)."""
    x = x_ref[...]

    h = jnp.dot(x, w1_ref[...], preferred_element_type=jnp.float32) + b1_ref[...]
    h = jnp.maximum(h, 0.0)

    h = jnp.dot(h, w2_ref[...], preferred_element_type=jnp.float32) + b2_ref[...]
    h = jnp.maximum(h, 0.0)

    h = jnp.dot(h, w3_ref[...], preferred_element_type=jnp.float32) + b3_ref[...]
    h = jnp.maximum(h, 0.0)

    logits = jnp.dot(h, w4_ref[...], preferred_element_type=jnp.float32) + b4_ref[...]

    # Mask the padded class lanes so they do not contribute to the softmax.
    col = lax.broadcasted_iota(jnp.int32, logits.shape, 1)
    logits = jnp.where(col < n_classes, logits, NEG_BIG)

    m = jnp.max(logits, axis=1, keepdims=True)
    e = jnp.exp(logits - m)
    denom = jnp.sum(e, axis=1, keepdims=True)
    # Exact divide: full-precision row normalization so softmax rows sum to 1.
    o_ref[...] = e / denom


def init_params(key, m_features, l_classes, dtype=jnp.float32):
    """Raw parameters with the same semantics as the PyTorch module.

    Linear weights are stored already transposed to [in, out]; BatchNorm1d is
    represented (inference mode) by per-feature scale s and shift t.
    """
    dims = [(m_features, HIDDEN), (HIDDEN, HIDDEN), (HIDDEN, HIDDEN), (HIDDEN, l_classes)]
    params = {}
    for i, (fan_in, fan_out) in enumerate(dims, start=1):
        key, kw, kb = jax.random.split(key, 3)
        bound = 1.0 / jnp.sqrt(fan_in)
        params[f"w{i}"] = jax.random.uniform(kw, (fan_in, fan_out), dtype, -bound, bound)
        params[f"b{i}"] = jax.random.uniform(kb, (1, fan_out), dtype, -bound, bound)
    for i in range(1, 4):
        key, kg, kb2, km, kv = jax.random.split(key, 5)
        gamma = 1.0 + 0.1 * jax.random.normal(kg, (1, HIDDEN), dtype)
        beta = 0.1 * jax.random.normal(kb2, (1, HIDDEN), dtype)
        rmean = 0.1 * jax.random.normal(km, (1, HIDDEN), dtype)
        rvar = jnp.abs(1.0 + 0.1 * jax.random.normal(kv, (1, HIDDEN), dtype))
        scale = gamma / jnp.sqrt(rvar + BN_EPS)
        shift = beta - rmean * scale
        params[f"s{i}"] = scale
        params[f"t{i}"] = shift
    return params


def fold_and_pad(params, m_features, weight_dtype=jnp.float32):
    """Fold BN scale/shift into the following linear and zero-pad to lane-friendly shapes."""
    w1, b1 = params["w1"], params["b1"]
    # (relu(.)*s + t) @ W + b  ==  relu(.) @ (s[:,None]*W) + (t @ W + b)
    w2 = params["s1"].reshape(-1, 1) * params["w2"]
    b2 = params["t1"] @ params["w2"] + params["b2"]
    w3 = params["s2"].reshape(-1, 1) * params["w3"]
    b3 = params["t2"] @ params["w3"] + params["b3"]
    w4 = params["s3"].reshape(-1, 1) * params["w4"]
    b4 = params["t3"] @ params["w4"] + params["b4"]

    def pad(a, rows, cols):
        return jnp.pad(a, ((0, rows - a.shape[0]), (0, cols - a.shape[1])))

    return dict(
        w1=pad(w1, m_features, H_PAD).astype(weight_dtype),
        b1=pad(b1, 1, H_PAD).astype(jnp.float32),
        w2=pad(w2, H_PAD, H_PAD).astype(weight_dtype),
        b2=pad(b2, 1, H_PAD).astype(jnp.float32),
        w3=pad(w3, H_PAD, H_PAD).astype(weight_dtype),
        b3=pad(b3, 1, H_PAD).astype(jnp.float32),
        w4=pad(w4, H_PAD, C_PAD).astype(weight_dtype),
        b4=pad(b4, 1, C_PAD).astype(jnp.float32),
    )


def mlp_forward(x, folded, n_classes):
    B, F = x.shape
    # Row-tile of the batch; at large B this shards across cores (parallel grid).
    TM = min(256, _round_up(B, 8))
    B_pad = _round_up(B, TM)
    if B_pad != B:
        x = jnp.pad(x, ((0, B_pad - B), (0, 0)))
    grid = (B_pad // TM,)

    kernel = functools.partial(mlp_kernel, n_classes)
    const = lambda i: (0, 0)  # weights/biases: same full block every grid step

    out = pl.pallas_call(
        kernel,
        out_shape=jax.ShapeDtypeStruct((B_pad, C_PAD), jnp.float32),
        grid=grid,
        in_specs=[
            pl.BlockSpec((TM, F), lambda i: (i, 0)),
            pl.BlockSpec((F, H_PAD), const),
            pl.BlockSpec((1, H_PAD), const),
            pl.BlockSpec((H_PAD, H_PAD), const),
            pl.BlockSpec((1, H_PAD), const),
            pl.BlockSpec((H_PAD, H_PAD), const),
            pl.BlockSpec((1, H_PAD), const),
            pl.BlockSpec((H_PAD, C_PAD), const),
            pl.BlockSpec((1, C_PAD), const),
        ],
        out_specs=pl.BlockSpec((TM, C_PAD), lambda i: (i, 0)),
        compiler_params=pltpu.CompilerParams(dimension_semantics=("parallel",)),
    )(x,
      folded["w1"], folded["b1"],
      folded["w2"], folded["b2"],
      folded["w3"], folded["b3"],
      folded["w4"], folded["b4"])

    return out[:B, :n_classes]


def mlp_reference(x, params):
    """Pure-JAX reference using the ORIGINAL (unfolded, unpadded) parameters."""
    h = x
    for i in range(1, 4):
        h = jnp.maximum(h @ params[f"w{i}"] + params[f"b{i}"], 0.0)
        h = h * params[f"s{i}"] + params[f"t{i}"]
    logits = h @ params["w4"] + params["b4"]
    return jax.nn.softmax(logits, axis=1)


if __name__ == "__main__":
    B, M_FEATURES, L_CLASSES = 8, 32, 10

    key = jax.random.PRNGKey(0)
    key, kx = jax.random.split(key)
    x = jax.random.normal(kx, (B, M_FEATURES), dtype=jnp.float32)

    raw_params = init_params(key, M_FEATURES, L_CLASSES)
    folded = fold_and_pad(raw_params, M_FEATURES)

    out = mlp_forward(x, folded, L_CLASSES)
    out = jax.block_until_ready(out)

    ref = mlp_reference(x, raw_params)
    assert out.shape == (B, L_CLASSES)
    # Exact-divide softmax: only BN-folding / padded-K accumulation-order noise remains.
    assert jnp.allclose(out, ref, atol=2e-4, rtol=2e-4), "mismatch vs reference"
    assert jnp.allclose(jnp.sum(out, axis=1), 1.0, atol=1e-3), "softmax rows must sum to ~1"

    print("KERNEL_OK")
</pallas_src>

<mosaic_0001>
module attributes {stable_mosaic.version = 11 : i64} {
  func.func @mlp_kernel(%arg0: i32, %arg1: memref<8x32xf32, #tpu.memory_space<vmem>>, %arg2: memref<32x384xf32, #tpu.memory_space<vmem>>, %arg3: memref<1x384xf32, #tpu.memory_space<vmem>>, %arg4: memref<384x384xf32, #tpu.memory_space<vmem>>, %arg5: memref<1x384xf32, #tpu.memory_space<vmem>>, %arg6: memref<384x384xf32, #tpu.memory_space<vmem>>, %arg7: memref<1x384xf32, #tpu.memory_space<vmem>>, %arg8: memref<384x128xf32, #tpu.memory_space<vmem>>, %arg9: memref<1x128xf32, #tpu.memory_space<vmem>>, %arg10: memref<8x128xf32, #tpu.memory_space<vmem>>) attributes {dimension_semantics = [#tpu.dimension_semantics<parallel>], iteration_bounds = array<i64: 1>, scalar_prefetch = 0 : i64, scratch_operands = 0 : i64, tpu.core_type = #tpu.core_type<tc>, window_params = [{transform_indices = @transform_0, window_bounds = array<i64: 8, 32>}, {pipeline_mode = #tpu.pipeline_mode<synchronous>, transform_indices = @transform_1, window_bounds = array<i64: 32, 384>}, {pipeline_mode = #tpu.pipeline_mode<synchronous>, transform_indices = @transform_2, window_bounds = array<i64: 1, 384>}, {pipeline_mode = #tpu.pipeline_mode<synchronous>, transform_indices = @transform_3, window_bounds = array<i64: 384, 384>}, {pipeline_mode = #tpu.pipeline_mode<synchronous>, transform_indices = @transform_4, window_bounds = array<i64: 1, 384>}, {pipeline_mode = #tpu.pipeline_mode<synchronous>, transform_indices = @transform_5, window_bounds = array<i64: 384, 384>}, {pipeline_mode = #tpu.pipeline_mode<synchronous>, transform_indices = @transform_6, window_bounds = array<i64: 1, 384>}, {pipeline_mode = #tpu.pipeline_mode<synchronous>, transform_indices = @transform_7, window_bounds = array<i64: 384, 128>}, {pipeline_mode = #tpu.pipeline_mode<synchronous>, transform_indices = @transform_8, window_bounds = array<i64: 1, 128>}, {transform_indices = @transform_9, window_bounds = array<i64: 8, 128>}]} {
    %c0 = arith.constant 0 : index
    %c0_0 = arith.constant 0 : index
    %0 = vector.load %arg1[%c0, %c0_0] : memref<8x32xf32, #tpu.memory_space<vmem>>, vector<8x32xf32>
    %c0_1 = arith.constant 0 : index
    %c0_2 = arith.constant 0 : index
    %1 = vector.load %arg2[%c0_1, %c0_2] : memref<32x384xf32, #tpu.memory_space<vmem>>, vector<32x384xf32>
    %cst = arith.constant dense<0.000000e+00> : vector<8x384xf32>
    %2 = tpu.matmul %0, %1, %cst {dimension_numbers = #tpu.dot_dimension_numbers<[1], [0], [0], [1], [0, 0, 1, 1], [], []>} : vector<8x32xf32>, vector<32x384xf32>, vector<8x384xf32> -> vector<8x384xf32>
    %c0_3 = arith.constant 0 : index
    %c0_4 = arith.constant 0 : index
    %3 = vector.load %arg3[%c0_3, %c0_4] : memref<1x384xf32, #tpu.memory_space<vmem>>, vector<1x384xf32>
    %4 = vector.broadcast %3 : vector<1x384xf32> to vector<8x384xf32>
    %5 = arith.addf %2, %4 : vector<8x384xf32>
    %cst_5 = arith.constant 0.000000e+00 : f32
    %6 = vector.broadcast %cst_5 : f32 to vector<8x384xf32>
    %7 = arith.maximumf %5, %6 : vector<8x384xf32>
    %c0_6 = arith.constant 0 : index
    %c0_7 = arith.constant 0 : index
    %8 = vector.load %arg4[%c0_6, %c0_7] : memref<384x384xf32, #tpu.memory_space<vmem>>, vector<384x384xf32>
    %cst_8 = arith.constant dense<0.000000e+00> : vector<8x384xf32>
    %9 = tpu.matmul %7, %8, %cst_8 {dimension_numbers = #tpu.dot_dimension_numbers<[1], [0], [0], [1], [0, 0, 1, 1], [], []>} : vector<8x384xf32>, vector<384x384xf32>, vector<8x384xf32> -> vector<8x384xf32>
    %c0_9 = arith.constant 0 : index
    %c0_10 = arith.constant 0 : index
    %10 = vector.load %arg5[%c0_9, %c0_10] : memref<1x384xf32, #tpu.memory_space<vmem>>, vector<1x384xf32>
    %11 = vector.broadcast %10 : vector<1x384xf32> to vector<8x384xf32>
    %12 = arith.addf %9, %11 : vector<8x384xf32>
    %cst_11 = arith.constant 0.000000e+00 : f32
    %13 = vector.broadcast %cst_11 : f32 to vector<8x384xf32>
    %14 = arith.maximumf %12, %13 : vector<8x384xf32>
    %c0_12 = arith.constant 0 : index
    %c0_13 = arith.constant 0 : index
    %15 = vector.load %arg6[%c0_12, %c0_13] : memref<384x384xf32, #tpu.memory_space<vmem>>, vector<384x384xf32>
    %cst_14 = arith.constant dense<0.000000e+00> : vector<8x384xf32>
    %16 = tpu.matmul %14, %15, %cst_14 {dimension_numbers = #tpu.dot_dimension_numbers<[1], [0], [0], [1], [0, 0, 1, 1], [], []>} : vector<8x384xf32>, vector<384x384xf32>, vector<8x384xf32> -> vector<8x384xf32>
    %c0_15 = arith.constant 0 : index
    %c0_16 = arith.constant 0 : index
    %17 = vector.load %arg7[%c0_15, %c0_16] : memref<1x384xf32, #tpu.memory_space<vmem>>, vector<1x384xf32>
    %18 = vector.broadcast %17 : vector<1x384xf32> to vector<8x384xf32>
    %19 = arith.addf %16, %18 : vector<8x384xf32>
    %cst_17 = arith.constant 0.000000e+00 : f32
    %20 = vector.broadcast %cst_17 : f32 to vector<8x384xf32>
    %21 = arith.maximumf %19, %20 : vector<8x384xf32>
    %c0_18 = arith.constant 0 : index
    %c0_19 = arith.constant 0 : index
    %22 = vector.load %arg8[%c0_18, %c0_19] : memref<384x128xf32, #tpu.memory_space<vmem>>, vector<384x128xf32>
    %cst_20 = arith.constant dense<0.000000e+00> : vector<8x128xf32>
    %23 = tpu.matmul %21, %22, %cst_20 {dimension_numbers = #tpu.dot_dimension_numbers<[1], [0], [0], [1], [0, 0, 1, 1], [], []>} : vector<8x384xf32>, vector<384x128xf32>, vector<8x128xf32> -> vector<8x128xf32>
    %c0_21 = arith.constant 0 : index
    %c0_22 = arith.constant 0 : index
    %24 = vector.load %arg9[%c0_21, %c0_22] : memref<1x128xf32, #tpu.memory_space<vmem>>, vector<1x128xf32>
    %25 = vector.broadcast %24 : vector<1x128xf32> to vector<8x128xf32>
    %26 = arith.addf %23, %25 : vector<8x128xf32>
    %27 = tpu.iota {dimensions = array<i32: 1>} : vector<8x128xi32>
    %c10_i32 = arith.constant 10 : i32
    %28 = vector.broadcast %c10_i32 : i32 to vector<8x128xi32>
    %29 = arith.cmpi slt, %27, %28 : vector<8x128xi32>
    %cst_23 = arith.constant -1.000000e+30 : f32
    %30 = vector.broadcast %cst_23 : f32 to vector<8x128xf32>
    %31 = arith.select %29, %26, %30 : vector<8x128xi1>, vector<8x128xf32>
    %cst_24 = arith.constant dense<0xFF800000> : vector<8xf32>
    %32 = vector.multi_reduction <maximumf>, %31, %cst_24 [1] : vector<8x128xf32> to vector<8xf32>
    %33 = vector.shape_cast %32 : vector<8xf32> to vector<8x1xf32>
    %34 = vector.broadcast %33 : vector<8x1xf32> to vector<8x128xf32>
    %35 = arith.subf %31, %34 : vector<8x128xf32>
    %36 = math.exp %35 : vector<8x128xf32>
    %cst_25 = arith.constant dense<0.000000e+00> : vector<8xf32>
    %37 = vector.multi_reduction <add>, %36, %cst_25 [1] : vector<8x128xf32> to vector<8xf32>
    %38 = vector.shape_cast %37 : vector<8xf32> to vector<8x1xf32>
    %39 = vector.broadcast %38 : vector<8x1xf32> to vector<8x128xf32>
    %40 = arith.divf %36, %39 : vector<8x128xf32>
    %c0_26 = arith.constant 0 : index
    %c0_27 = arith.constant 0 : index
    %41 = vector.load %arg10[%c0_26, %c0_27] : memref<8x128xf32, #tpu.memory_space<vmem>>, vector<8x128xf32>
    tpu.vector_store %arg10[%c0_26, %c0_27], %40 {strides = array<i32>} : memref<8x128xf32, #tpu.memory_space<vmem>>, vector<8x128xf32>,
    return
  }
  func.func @transform_0(%arg0: i32) -> (i32, i32) {
    %c0_i32 = arith.constant 0 : i32
    %c0_i32_0 = arith.constant 0 : i32
    return %arg0, %c0_i32 : i32, i32
  }
  func.func @transform_1(%arg0: i32) -> (i32, i32) {
    %c0_i32 = arith.constant 0 : i32
    %c0_i32_0 = arith.constant 0 : i32
    %c0_i32_1 = arith.constant 0 : i32
    return %c0_i32, %c0_i32_0 : i32, i32
  }
  func.func @transform_2(%arg0: i32) -> (i32, i32) {
    %c0_i32 = arith.constant 0 : i32
    %c0_i32_0 = arith.constant 0 : i32
    %c0_i32_1 = arith.constant 0 : i32
    return %c0_i32, %c0_i32_0 : i32, i32
  }
  func.func @transform_3(%arg0: i32) -> (i32, i32) {
    %c0_i32 = arith.constant 0 : i32
    %c0_i32_0 = arith.constant 0 : i32
    %c0_i32_1 = arith.constant 0 : i32
    return %c0_i32, %c0_i32_0 : i32, i32
  }
  func.func @transform_4(%arg0: i32) -> (i32, i32) {
    %c0_i32 = arith.constant 0 : i32
    %c0_i32_0 = arith.constant 0 : i32
    %c0_i32_1 = arith.constant 0 : i32
    return %c0_i32, %c0_i32_0 : i32, i32
  }
  func.func @transform_5(%arg0: i32) -> (i32, i32) {
    %c0_i32 = arith.constant 0 : i32
    %c0_i32_0 = arith.constant 0 : i32
    %c0_i32_1 = arith.constant 0 : i32
    return %c0_i32, %c0_i32_0 : i32, i32
  }
  func.func @transform_6(%arg0: i32) -> (i32, i32) {
    %c0_i32 = arith.constant 0 : i32
    %c0_i32_0 = arith.constant 0 : i32
    %c0_i32_1 = arith.constant 0 : i32
    return %c0_i32, %c0_i32_0 : i32, i32
  }
  func.func @transform_7(%arg0: i32) -> (i32, i32) {
    %c0_i32 = arith.constant 0 : i32
    %c0_i32_0 = arith.constant 0 : i32
    %c0_i32_1 = arith.constant 0 : i32
    return %c0_i32, %c0_i32_0 : i32, i32
  }
  func.func @transform_8(%arg0: i32) -> (i32, i32) {
    %c0_i32 = arith.constant 0 : i32
    %c0_i32_0 = arith.constant 0 : i32
    %c0_i32_1 = arith.constant 0 : i32
    return %c0_i32, %c0_i32_0 : i32, i32
  }
  func.func @transform_9(%arg0: i32) -> (i32, i32) {
    %c0_i32 = arith.constant 0 : i32
    %c0_i32_0 = arith.constant 0 : i32
    return %arg0, %c0_i32 : i32, i32
  }
}

</mosaic_0001>

<bundles_post_ra>
// kernel: tpu_custom_call.1
= control target key start
LH: loop header
LB: loop body
LE: loop exit
PB: predicated region body
PF: predicated region fallthrough
CT: control target
= control target key end

     0   :  { %14 = vsyncpa [#allocation3], 0  ;;  %s2028_s0 = inlined_call_operand.hbm [shape: f32[8,32], index: 0, kind: input, shape index: {}]   ;;  %s2029_s1 = inlined_call_operand.hbm [shape: f32[32,384], index: 1, kind: input, shape index: {}]   ;;  %s2030_s2 = inlined_call_operand.vmem [shape: f32[1,384], index: 2, kind: input, shape index: {}]   ;;  %s2031_s3 = inlined_call_operand.hbm [shape: f32[384,384], index: 3, kind: input, shape index: {}]   ;;  %s2032_s4 = inlined_call_operand.vmem [shape: f32[1,384], index: 4, kind: input, shape index: {}]   ;;  %s2033_s5 = inlined_call_operand.hbm [shape: f32[384,384], index: 5, kind: input, shape index: {}]   ;;  %s2034_s6 = inlined_call_operand.vmem [shape: f32[1,384], index: 6, kind: input, shape index: {}]   ;;  %s2035_s7 = inlined_call_operand.hbm [shape: f32[384,128], index: 7, kind: input, shape index: {}]   ;;  %s2036_s8 = inlined_call_operand.vmem [shape: f32[1,128], index: 8, kind: input, shape index: {}]   ;;  %s2037_s9 = inlined_call_operand.hbm [shape: f32[8,128], index: 9, kind: output, shape index: {}]  }
   0x1   :  { %15 = vsyncpa [#allocation6], 0 }
   0x2   :  { %16 = vsyncpa [#allocation9], 0 }
   0x3   :  { %17 = vsyncpa [#allocation4], 0  ;;  %s1819_s30 = smov [#allocation5]  }
   0x4   :  { %s33_s10 = sshll.u32 %s1819_s30, 4  ;;  %s34_s10 = int_to_ptr.vmem [resolvable:$true] %s33_s10 }
   0x5   :  { %s1699_s11 = scalar_lea.vmem %s34_s10, 1536  ;;  %p1704_p1 = scmp.lt.s32.totalorder %s34_s10, %s34_s10 }
   0x6   :  { %p1700_p0 = scmp.ne.s32.totalorder %s34_s10, %s1699_s11  ;;  %p1705_p2 = scmp.lt.s32.totalorder %s1699_s11, %s1699_s11 }
   0x8   :  { %p1706_p3 = por %p1705_p2, %p1704_p1 }
   0xa   :  { %p1707_p4 = pnand %p1706_p3, %p1700_p0 }
   0xc   :  { %1710 = shalt.err (!%p1707_p4)
}
   0xd   :  { %s1820_s12 = smov 384   ;;  %s1821_s13 = smov 24  }
   0xe   :  { %39 = dma.hbm_to_vmem [thread:$0]  %s2029_s1, 1536, %s34_s10, [#allocation6], %s1820_s12, %s1820_s12, %s1821_s13  }
   0xf   :  { %s1822_s16 = smov [#allocation8]   ;;  %s1823_s18 = smov [#allocation2]  }
  0x10   :  { %s61_s17 = sshll.u32 %s1822_s16, 4  ;;  %s24_s19 = sshll.u32 %s1823_s18, 4  ;;  %s62_s17 = int_to_ptr.vmem [resolvable:$true] %s61_s17  ;;  %s25_s19 = int_to_ptr.vmem [resolvable:$true] %s24_s19 }
  0x11   :  { %s1719_s20 = scalar_lea.vmem %s62_s17, 18432  ;;  %p1724_p6 = scmp.lt.s32.totalorder %s62_s17, %s62_s17 }
  0x12   :  { %p1720_p5 = scmp.ne.s32.totalorder %s62_s17, %s1719_s20  ;;  %p1725_p7 = scmp.lt.s32.totalorder %s1719_s20, %s1719_s20 }
  0x14   :  { %p1726_p8 = por %p1725_p7, %p1724_p6 }
  0x16   :  { %p1727_p9 = pnand %p1726_p8, %p1720_p5 }
  0x18   :  { %1730 = shalt.err (!%p1727_p9)
}
  0x19   :  { %67 = dma.hbm_to_vmem [thread:$0]  %s2033_s5, 18432, %s62_s17, [#allocation9], %s1820_s12, %s1820_s12, %s1821_s13  }
  0x1a   :  { %s1739_s1 = scalar_lea.vmem %s25_s19, 128  ;;  %p1744_p11 = scmp.lt.s32.totalorder %s25_s19, %s25_s19 }
  0x1b   :  { %p1740_p10 = scmp.ne.s32.totalorder %s25_s19, %s1739_s1  ;;  %p1745_p12 = scmp.lt.s32.totalorder %s1739_s1, %s1739_s1 }
  0x1d   :  { %p1746_p13 = por %p1745_p12, %p1744_p11 }
  0x1f   :  { %p1747_p0 = pnand %p1746_p13, %p1740_p10 }
  0x21   :  { %1750 = shalt.err (!%p1747_p0)
}
  0x22   :  { %27 = dma.hbm_to_vmem [thread:$0]  %s2028_s0, 128, %s25_s19, [#allocation3]  }
  0x23   :  { %s1824_s25 = smov [#allocation7]   ;;  %s1825_s27 = smov [#allocation10]  }
  0x24   :  { %s47_s26 = sshll.u32 %s1824_s25, 4  ;;  %s75_s28 = sshll.u32 %s1825_s27, 4  ;;  %s48_s26 = int_to_ptr.vmem [resolvable:$true] %s47_s26  ;;  %s76_s28 = int_to_ptr.vmem [resolvable:$true] %s75_s28 }
  0x25   :  { %s1759_s29 = scalar_lea.vmem %s48_s26, 18432  ;;  %p1764_p2 = scmp.lt.s32.totalorder %s48_s26, %s48_s26 }
  0x26   :  { %p1760_p1 = scmp.ne.s32.totalorder %s48_s26, %s1759_s29  ;;  %p1765_p3 = scmp.lt.s32.totalorder %s1759_s29, %s1759_s29 }
  0x28   :  { %p1766_p4 = por %p1765_p3, %p1764_p2 }
  0x2a   :  { %p1767_p5 = pnand %p1766_p4, %p1760_p1 }
  0x2c   :  { %1770 = shalt.err (!%p1767_p5)
}
  0x2d   :  { %53 = dma.hbm_to_vmem [thread:$0]  %s2031_s3, 18432, %s48_s26, [#allocation6], %s1820_s12, %s1820_s12, %s1821_s13  }
  0x2e   :  { %s1779_s0 = scalar_lea.vmem %s76_s28, 6144  ;;  %p1784_p7 = scmp.lt.s32.totalorder %s76_s28, %s76_s28 }
  0x2f   :  { %p1780_p6 = scmp.ne.s32.totalorder %s76_s28, %s1779_s0  ;;  %p1785_p8 = scmp.lt.s32.totalorder %s1779_s0, %s1779_s0 }
  0x31   :  { %p1786_p9 = por %p1785_p8, %p1784_p7 }
  0x33   :  { %p1787_p10 = pnand %p1786_p9, %p1780_p6 }
  0x35   :  { %1790 = shalt.err (!%p1787_p10)
}
  0x36   :  { %s1826_s10 = smov 128   ;;  %s1827_s11 = smov 8  }
  0x37   :  { %81 = dma.hbm_to_vmem [thread:$0]  %s2035_s7, 6144, %s76_s28, [#allocation9], %s1826_s10, %s1826_s10, %s1827_s11  }
  0x38   :  { %1811 = dma.done.wait [#allocation3], 128  }
  0x39   :  { %1812 = vsyncadd [#allocation3], 4294967168 }
  0x3a   :  { %1813 = dma.done.wait [#allocation6], 19968  }
  0x3b   :  { %1814 = vsyncadd [#allocation6], 4294947328 }
  0x3c   :  { %1815 = dma.done.wait [#allocation9], 24576  }
  0x3d   :  { %1816 = vsyncadd [#allocation9], 4294942720  ;;  %v1828_v0 = vmov 0.0   ;;  %vm1829_vm0 = vmmov 0   ;;  %v110_v1 = vld [vmem:[#allocation5 + $0x50] sm:$0xff]  ;;  %v111_v2 = vld [vmem:[#allocation5 + $0x58] sm:$0xff] }
  0x3e   :  { %1559 = vmatprep.subr.mxu1 %v1828_v0  ;;  %1567 = vmatprep.mubr.msk.f32.mxu1 %vm1829_vm0, %v1828_v0  ;;  %v109_v3 = vld [vmem:[#allocation5 + $0x48] sm:$0xff]  ;;  %v107_v4 = vld [vmem:[#allocation5 + $0x38] sm:$0xff]  ;;  %v108_v5 = vld [vmem:[#allocation5 + $0x40] sm:$0xff]  ;;  %vm129_vm1 = vcmask 261120   ;;  %s1830_s17 = smov [#allocation11]  }
  0x3f   :  { %197 = vmatprep.mubr.f32.mxu0 %v1828_v0  ;;  %157 = vmatprep.subr.mxu0 %v110_v1  ;;  %v106_v6 = vld [vmem:[#allocation5 + $0x30] sm:$0xff]  ;;  %v104_v7 = vld [vmem:[#allocation5 + $0x20] sm:$0xff]  ;;  %v105_v8 = vld [vmem:[#allocation5 + $0x28] sm:$0xff]  ;;  %s1384_s18 = sshll.u32 %s1830_s17, 4  ;;  %s1385_s18 = int_to_ptr.vmem [resolvable:$true] %s1384_s18 }
  0x40   :  { %1560 = vmatpush3.msra.mxu1 %v111_v2  ;;  %158 = vmatpush1.msra.mxu0 %v109_v3  ;;  %v103_v9 = vld [vmem:[#allocation5 + $0x18] sm:$0xff]  ;;  %v101_v10 = vld [vmem:[#allocation5 + $0x8] sm:$0xff]  ;;  %v102_v11 = vld [vmem:[#allocation5 + $0x10] sm:$0xff]  ;;  %p1796_p12 = scmp.lt.s32.totalorder %s1385_s18, %s1385_s18 }
  0x41   :  { %1561 = vmatprep.subr.mxu1 %v1828_v0  ;;  %159 = vmatprep.subr.mxu0 %v107_v4  ;;  %v100_v12 = vld [vmem:[#allocation5] sm:$0xff]  ;;  %v99_v13 = vld [vmem:[#allocation2] sm:$0xff]  ;;  %v323_v14 = vld [vmem:[#allocation7 + $0x170] sm:$0xff] }
  0x42   :  { %1562 = vmatpush3.msra.mxu1 %v108_v5  ;;  %160 = vmatpush1.msra.mxu0 %v106_v6  ;;  %v322_v15 = vld [vmem:[#allocation7 + $0x168] sm:$0xff]  ;;  %v320_v16 = vld [vmem:[#allocation7 + $0x158] sm:$0xff]  ;;  %v319_v17 = vld [vmem:[#allocation7 + $0x150] sm:$0xff] }
  0x43   :  { %1563 = vmatprep.subr.mxu1 %v1828_v0  ;;  %161 = vmatprep.subr.mxu0 %v104_v7  ;;  %v317_v18 = vld [vmem:[#allocation7 + $0x140] sm:$0xff]  ;;  %v316_v19 = vld [vmem:[#allocation7 + $0x138] sm:$0xff]  ;;  %v314_v20 = vld [vmem:[#allocation7 + $0x128] sm:$0xff] }
  0x44   :  { %1564 = vmatpush3.msra.mxu1 %v105_v8  ;;  %162 = vmatpush1.msra.mxu0 %v103_v9  ;;  %v313_v21 = vld [vmem:[#allocation7 + $0x120] sm:$0xff]  ;;  %v311_v22 = vld [vmem:[#allocation7 + $0x110] sm:$0xff]  ;;  %v418_v24 = vld [vmem:[#allocation7 + $0x468] sm:$0xff] }
  0x45   :  { %1565 = vmatprep.subr.mxu1 %v1828_v0  ;;  %163 = vmatprep.subr.mxu0 %v101_v10  ;;  %v419_v23 = vld [vmem:[#allocation7 + $0x470] sm:$0xff]  ;;  %v310_v25 = vld [vmem:[#allocation7 + $0x108] sm:$0xff]  ;;  %v416_v26 = vld [vmem:[#allocation7 + $0x458] sm:$0xff] }
  0x46   :  { %1566 = vmatpush3.msra.mxu1 %v102_v11  ;;  %164 = vmatpush1.msra.mxu0 %v100_v12  ;;  %v308_v27 = vld [vmem:[#allocation7 + $0xf8] sm:$0xff]  ;;  %v415_v28 = vld [vmem:[#allocation7 + $0x450] sm:$0xff]  ;;  %v413_v29 = vld [vmem:[#allocation7 + $0x440] sm:$0xff] }
  0x47   :  { %1568 = vmatmul.mubr.msk.f32.vlgmr.msra.gmra.mxu1 %vm129_vm1, %v99_v13  ;;  %1395 = vmatmul.mubr.msk.f32.vlgmr.msra.gmra.mxu0 %vm129_vm1, %v99_v13  ;;  %v307_v30 = vld [vmem:[#allocation7 + $0xf0] sm:$0xff]  ;;  %v412_v31 = vld [vmem:[#allocation7 + $0x438] sm:$0xff]  ;;  %v305_v32 = vld [vmem:[#allocation7 + $0xe0] sm:$0xff] }
  0x48   :  { %438 = vmatprep.subr.mxu0 %v323_v14  ;;  %573 = vmatprep.mubr.f32.mxu1 %v1828_v0  ;;  %v410_v33 = vld [vmem:[#allocation7 + $0x428] sm:$0xff]  ;;  %v304_v34 = vld [vmem:[#allocation7 + $0xd8] sm:$0xff]  ;;  %v409_v35 = vld [vmem:[#allocation7 + $0x420] sm:$0xff] }
  0x49   :  { %439 = vmatpush1.msra.mxu0 %v322_v15  ;;  %509 = vmatprep.subr.mxu1 %v419_v23  ;;  %v302_v36 = vld [vmem:[#allocation7 + $0xc8] sm:$0xff]  ;;  %v407_v37 = vld [vmem:[#allocation7 + $0x410] sm:$0xff]  ;;  %v301_v38 = vld [vmem:[#allocation7 + $0xc0] sm:$0xff] }
  0x4a   :  { %440 = vmatprep.subr.mxu0 %v320_v16  ;;  %510 = vmatpush1.msra.mxu1 %v418_v24  ;;  %v406_v39 = vld [vmem:[#allocation7 + $0x408] sm:$0xff]  ;;  %v299_v40 = vld [vmem:[#allocation7 + $0xb0] sm:$0xff]  ;;  %v404_v41 = vld [vmem:[#allocation7 + $0x3f8] sm:$0xff] }
  0x4b   :  { %441 = vmatpush1.msra.mxu0 %v319_v17  ;;  %511 = vmatprep.subr.mxu1 %v416_v26  ;;  %v298_v42 = vld [vmem:[#allocation7 + $0xa8] sm:$0xff]  ;;  %v403_v43 = vld [vmem:[#allocation7 + $0x3f0] sm:$0xff]  ;;  %v296_v44 = vld [vmem:[#allocation7 + $0x98] sm:$0xff] }
  0x4c   :  { %442 = vmatprep.subr.mxu0 %v317_v18  ;;  %512 = vmatpush1.msra.mxu1 %v415_v28  ;;  %v401_v45 = vld [vmem:[#allocation7 + $0x3e0] sm:$0xff]  ;;  %v295_v46 = vld [vmem:[#allocation7 + $0x90] sm:$0xff]  ;;  %v400_v47 = vld [vmem:[#allocation7 + $0x3d8] sm:$0xff] }
  0x4d   :  { %443 = vmatpush1.msra.mxu0 %v316_v19  ;;  %513 = vmatprep.subr.mxu1 %v413_v29  ;;  %v293_v48 = vld [vmem:[#allocation7 + $0x80] sm:$0xff]  ;;  %v398_v49 = vld [vmem:[#allocation7 + $0x3c8] sm:$0xff]  ;;  %v292_v50 = vld [vmem:[#allocation7 + $0x78] sm:$0xff] }
  0x4e   :  { %444 = vmatprep.subr.mxu0 %v314_v20  ;;  %514 = vmatpush1.msra.mxu1 %v412_v31  ;;  %v397_v51 = vld [vmem:[#allocation7 + $0x3c0] sm:$0xff]  ;;  %v290_v52 = vld [vmem:[#allocation7 + $0x68] sm:$0xff]  ;;  %v395_v53 = vld [vmem:[#allocation7 + $0x3b0] sm:$0xff] }
  0x4f   :  { %445 = vmatpush1.msra.mxu0 %v313_v21  ;;  %515 = vmatprep.subr.mxu1 %v410_v33  ;;  %v289_v54 = vld [vmem:[#allocation7 + $0x60] sm:$0xff]  ;;  %v394_v55 = vld [vmem:[#allocation7 + $0x3a8] sm:$0xff]  ;;  %v287_v56 = vld [vmem:[#allocation7 + $0x50] sm:$0xff] }
  0x50   :  { %446 = vmatprep.subr.mxu0 %v311_v22  ;;  %516 = vmatpush1.msra.mxu1 %v409_v35  ;;  %v392_v57 = vld [vmem:[#allocation7 + $0x398] sm:$0xff]  ;;  %v286_v58 = vld [vmem:[#allocation7 + $0x48] sm:$0xff]  ;;  %v391_v59 = vld [vmem:[#allocation7 + $0x390] sm:$0xff] }
  0x51   :  { %447 = vmatpush1.msra.mxu0 %v310_v25  ;;  %517 = vmatprep.subr.mxu1 %v407_v37  ;;  %v284_v60 = vld [vmem:[#allocation7 + $0x38] sm:$0xff]  ;;  %v389_v61 = vld [vmem:[#allocation7 + $0x380] sm:$0xff]  ;;  %v283_v62 = vld [vmem:[#allocation7 + $0x30] sm:$0xff] }
  0x52   :  { %448 = vmatprep.subr.mxu0 %v308_v27  ;;  %518 = vmatpush1.msra.mxu1 %v406_v39  ;;  %v388_v63 = vld [vmem:[#allocation7 + $0x378] sm:$0xff]  ;;  %v281_v1 = vld [vmem:[#allocation7 + $0x20] sm:$0xff]  ;;  %v386_v2 = vld [vmem:[#allocation7 + $0x368] sm:$0xff] }
  0x53   :  { %449 = vmatpush1.msra.mxu0 %v307_v30  ;;  %519 = vmatprep.subr.mxu1 %v404_v41  ;;  %v280_v3 = vld [vmem:[#allocation7 + $0x18] sm:$0xff]  ;;  %v385_v4 = vld [vmem:[#allocation7 + $0x360] sm:$0xff]  ;;  %v278_v5 = vld [vmem:[#allocation7 + $0x8] sm:$0xff] }
  0x54   :  { %450 = vmatprep.subr.mxu0 %v305_v32  ;;  %520 = vmatpush1.msra.mxu1 %v403_v43  ;;  %v383_v6 = vld [vmem:[#allocation7 + $0x350] sm:$0xff]  ;;  %v277_v7 = vld [vmem:[#allocation7] sm:$0xff]  ;;  %v382_v8 = vld [vmem:[#allocation7 + $0x348] sm:$0xff] }
  0x55   :  { %451 = vmatpush1.msra.mxu0 %v304_v34  ;;  %521 = vmatprep.subr.mxu1 %v401_v45  ;;  %v371_v9 = vld [vmem:[#allocation7 + $0x2f0] sm:$0xff]  ;;  %v380_v10 = vld [vmem:[#allocation7 + $0x338] sm:$0xff]  ;;  %v370_v11 = vld [vmem:[#allocation7 + $0x2e8] sm:$0xff] }
  0x56   :  { %452 = vmatprep.subr.mxu0 %v302_v36  ;;  %522 = vmatpush1.msra.mxu1 %v400_v47  ;;  %v379_v12 = vld [vmem:[#allocation7 + $0x330] sm:$0xff]  ;;  %v368_v13 = vld [vmem:[#allocation7 + $0x2d8] sm:$0xff]  ;;  %v365_v15 = vld [vmem:[#allocation7 + $0x2c0] sm:$0xff] }
  0x57   :  { %453 = vmatpush1.msra.mxu0 %v301_v38  ;;  %523 = vmatprep.subr.mxu1 %v398_v49  ;;  %v367_v14 = vld [vmem:[#allocation7 + $0x2d0] sm:$0xff]  ;;  %v364_v16 = vld [vmem:[#allocation7 + $0x2b8] sm:$0xff]  ;;  %v362_v17 = vld [vmem:[#allocation7 + $0x2a8] sm:$0xff] }
  0x58   :  { %454 = vmatprep.subr.mxu0 %v299_v40  ;;  %524 = vmatpush1.msra.mxu1 %v397_v51  ;;  %v361_v18 = vld [vmem:[#allocation7 + $0x2a0] sm:$0xff]  ;;  %v359_v19 = vld [vmem:[#allocation7 + $0x290] sm:$0xff]  ;;  %v358_v20 = vld [vmem:[#allocation7 + $0x288] sm:$0xff] }
  0x59   :  { %455 = vmatpush1.msra.mxu0 %v298_v42  ;;  %525 = vmatprep.subr.mxu1 %v395_v53  ;;  %v356_v21 = vld [vmem:[#allocation7 + $0x278] sm:$0xff]  ;;  %v355_v22 = vld [vmem:[#allocation7 + $0x270] sm:$0xff]  ;;  %v353_v23 = vld [vmem:[#allocation7 + $0x260] sm:$0xff] }
  0x5a   :  { %456 = vmatprep.subr.mxu0 %v296_v44  ;;  %526 = vmatpush1.msra.mxu1 %v394_v55  ;;  %v352_v24 = vld [vmem:[#allocation7 + $0x258] sm:$0xff]  ;;  %v350_v25 = vld [vmem:[#allocation7 + $0x248] sm:$0xff]  ;;  %v349_v26 = vld [vmem:[#allocation7 + $0x240] sm:$0xff] }
  0x5b   :  { %457 = vmatpush1.msra.mxu0 %v295_v46  ;;  %527 = vmatprep.subr.mxu1 %v392_v57  ;;  %v347_v27 = vld [vmem:[#allocation7 + $0x230] sm:$0xff]  ;;  %v346_v28 = vld [vmem:[#allocation7 + $0x228] sm:$0xff]  ;;  %v344_v29 = vld [vmem:[#allocation7 + $0x218] sm:$0xff] }
  0x5c   :  { %458 = vmatprep.subr.mxu0 %v293_v48  ;;  %528 = vmatpush1.msra.mxu1 %v391_v59  ;;  %v343_v30 = vld [vmem:[#allocation7 + $0x210] sm:$0xff]  ;;  %v341_v31 = vld [vmem:[#allocation7 + $0x200] sm:$0xff]  ;;  %v340_v32 = vld [vmem:[#allocation7 + $0x1f8] sm:$0xff]  ;;  %v114_v48 = vlaneseq }
  0x5d   :  { %459 = vmatpush1.msra.mxu0 %v292_v50  ;;  %529 = vmatprep.subr.mxu1 %v389_v61  ;;  %v338_v33 = vld [vmem:[#allocation7 + $0x1e8] sm:$0xff]  ;;  %v337_v34 = vld [vmem:[#allocation7 + $0x1e0] sm:$0xff]  ;;  %v335_v35 = vld [vmem:[#allocation7 + $0x1d0] sm:$0xff] }
  0x5e   :  { %460 = vmatprep.subr.mxu0 %v290_v52  ;;  %530 = vmatpush1.msra.mxu1 %v388_v63  ;;  %v377_v36 = vld [vmem:[#allocation7 + $0x320] sm:$0xff]  ;;  %v334_v37 = vld [vmem:[#allocation7 + $0x1c8] sm:$0xff]  ;;  %v376_v38 = vld [vmem:[#allocation7 + $0x318] sm:$0xff]  ;;  %v115_v49 = vshrl.u32 %v114_v48, 7 }
  0x5f   :  { %461 = vmatpush1.msra.mxu0 %v289_v54  ;;  %531 = vmatprep.subr.mxu1 %v386_v2  ;;  %v332_v39 = vld [vmem:[#allocation7 + $0x1b8] sm:$0xff]  ;;  %v374_v40 = vld [vmem:[#allocation7 + $0x308] sm:$0xff]  ;;  %v331_v41 = vld [vmem:[#allocation7 + $0x1b0] sm:$0xff] }
  0x60   :  { %462 = vmatprep.subr.mxu0 %v287_v56  ;;  %532 = vmatpush1.msra.mxu1 %v385_v4  ;;  %v373_v42 = vld [vmem:[#allocation7 + $0x300] sm:$0xff]  ;;  %v372_v44 = vld [vmem:[#allocation7 + $0x2f8] sm:$0xff]  ;;  %v326_v46 = vld [vmem:[#allocation7 + $0x188] sm:$0xff]  ;;  %v1915_v50 = vsub.s32 2, %v115_v49  ;;  %v1920_v52 = vsub.s32 0, %v115_v49  ;;  %v1922_v53 = vsub.s32 1, %v115_v49 }
  0x61   :  { %463 = vmatpush1.msra.mxu0 %v286_v58  ;;  %533 = vmatprep.subr.mxu1 %v383_v6  ;;  %v329_v43 = vld [vmem:[#allocation7 + $0x1a0] sm:$0xff]  ;;  %v328_v45 = vld [vmem:[#allocation7 + $0x198] sm:$0xff] }
  0x62   :  { %464 = vmatprep.subr.mxu0 %v284_v60  ;;  %534 = vmatpush1.msra.mxu1 %v382_v8  ;;  %v325_v47 = vld [vmem:[#allocation7 + $0x180] sm:$0xff]  ;;  %v112_v51 = vld [vmem:[%s2030_s2] sm:$0x7]  ;;  %v318_v8 = vld [vmem:[#allocation7 + $0x148] sm:$0xff] }
  0x63   :  { %465 = vmatpush1.msra.mxu0 %v283_v62  ;;  %535 = vmatprep.subr.mxu1 %v380_v10  ;;  %v125_v54 = vrot.slane %v112_v51, %v1915_v50  ;;  %v117_v55 = vrot.slane %v112_v51, %v1920_v52  ;;  %v121_v57 = vrot.slane %v112_v51, %v1922_v53  ;;  %v321_v4 = vld [vmem:[#allocation7 + $0x160] sm:$0xff]  ;;  %v363_v10 = vld [vmem:[#allocation7 + $0x2b0] sm:$0xff]  ;;  %v378_v51 = vld [vmem:[#allocation7 + $0x328] sm:$0xff] }
  0x64   :  { %466 = vmatprep.subr.mxu0 %v281_v1  ;;  %536 = vmatpush1.msra.mxu1 %v379_v12  ;;  %v324_v1 = vld [vmem:[#allocation7 + $0x178] sm:$0xff]  ;;  %v417_v12 = vld [vmem:[#allocation7 + $0x460] sm:$0xff] }
  0x65   :  { %467 = vmatpush1.msra.mxu0 %v280_v3  ;;  %537 = vmatprep.subr.mxu1 %v377_v36  ;;  %v369_v3 = vld [vmem:[#allocation7 + $0x2e0] sm:$0xff] }
  0x66   :  { %468 = vmatprep.subr.mxu0 %v278_v5  ;;  %538 = vmatpush1.msra.mxu1 %v376_v38  ;;  %v393_v36 = vld [vmem:[#allocation7 + $0x3a0] sm:$0xff]  ;;  %v288_v38 = vld [vmem:[#allocation7 + $0x58] sm:$0xff] }
  0x67   :  { %469 = vmatpush1.msra.mxu0 %v277_v7  ;;  %539 = vmatprep.subr.mxu1 %v374_v40  ;;  %v366_v7 = vld [vmem:[#allocation7 + $0x2c8] sm:$0xff]  ;;  %v333_v40 = vld [vmem:[#allocation7 + $0x1c0] sm:$0xff] }
  0x68   :  { %470 = vmatprep.subr.mxu0 %v371_v9  ;;  %540 = vmatpush1.msra.mxu1 %v373_v42  ;;  %v420_v9 = vld [vmem:[#allocation7 + $0x478] sm:$0xff]  ;;  %v387_v42 = vld [vmem:[#allocation7 + $0x370] sm:$0xff]  ;;  %v381_v49 = vld [vmem:[#allocation7 + $0x340] sm:$0xff] }
  0x69   :  { %471 = vmatpush2.msra.mxu0 %v370_v11  ;;  %1403 = vmatprep.subr.mxu1 %v372_v44  ;;  %v315_v11 = vld [vmem:[#allocation7 + $0x130] sm:$0xff]  ;;  %v282_v44 = vld [vmem:[#allocation7 + $0x28] sm:$0xff] }
  0x6a   :  { %472 = vmatprep.subr.mxu0 %v368_v13  ;;  %v360_v13 = vld [vmem:[#allocation7 + $0x298] sm:$0xff] }
  0x6b   :  { %473 = vmatpush2.msra.mxu0 %v367_v14  ;;  %v312_v14 = vld [vmem:[#allocation7 + $0x118] sm:$0xff] }
  0x6c   :  { %474 = vmatprep.subr.mxu0 %v365_v15  ;;  %v414_v15 = vld [vmem:[#allocation7 + $0x448] sm:$0xff] }
  0x6d   :  { %475 = vmatpush2.msra.mxu0 %v364_v16  ;;  %v357_v16 = vld [vmem:[#allocation7 + $0x280] sm:$0xff] }
  0x6e   :  { %476 = vmatprep.subr.mxu0 %v362_v17  ;;  %v309_v17 = vld [vmem:[#allocation7 + $0x100] sm:$0xff] }
  0x6f   :  { %477 = vmatpush2.msra.mxu0 %v361_v18  ;;  %v411_v18 = vld [vmem:[#allocation7 + $0x430] sm:$0xff] }
  0x70   :  { %478 = vmatprep.subr.mxu0 %v359_v19  ;;  %v354_v19 = vld [vmem:[#allocation7 + $0x268] sm:$0xff] }
  0x71   :  { %479 = vmatpush2.msra.mxu0 %v358_v20  ;;  %v306_v20 = vld [vmem:[#allocation7 + $0xe8] sm:$0xff] }
  0x72   :  { %480 = vmatprep.subr.mxu0 %v356_v21  ;;  %v408_v21 = vld [vmem:[#allocation7 + $0x418] sm:$0xff] }
  0x73   :  { %481 = vmatpush2.msra.mxu0 %v355_v22  ;;  %v351_v22 = vld [vmem:[#allocation7 + $0x250] sm:$0xff] }
  0x74   :  { %482 = vmatprep.subr.mxu0 %v353_v23  ;;  %v303_v23 = vld [vmem:[#allocation7 + $0xd0] sm:$0xff] }
  0x75   :  { %483 = vmatpush2.msra.mxu0 %v352_v24  ;;  %v405_v24 = vld [vmem:[#allocation7 + $0x400] sm:$0xff] }
  0x76   :  { %484 = vmatprep.subr.mxu0 %v350_v25  ;;  %v348_v25 = vld [vmem:[#allocation7 + $0x238] sm:$0xff] }
  0x77   :  { %485 = vmatpush2.msra.mxu0 %v349_v26  ;;  %v300_v26 = vld [vmem:[#allocation7 + $0xb8] sm:$0xff] }
  0x78   :  { %486 = vmatprep.subr.mxu0 %v347_v27  ;;  %v402_v27 = vld [vmem:[#allocation7 + $0x3e8] sm:$0xff] }
  0x79   :  { %487 = vmatpush2.msra.mxu0 %v346_v28  ;;  %v345_v28 = vld [vmem:[#allocation7 + $0x220] sm:$0xff] }
  0x7a   :  { %488 = vmatprep.subr.mxu0 %v344_v29  ;;  %v297_v29 = vld [vmem:[#allocation7 + $0xa0] sm:$0xff] }
  0x7b   :  { %489 = vmatpush2.msra.mxu0 %v343_v30  ;;  %v399_v30 = vld [vmem:[#allocation7 + $0x3d0] sm:$0xff] }
  0x7c   :  { %490 = vmatprep.subr.mxu0 %v341_v31  ;;  %v342_v31 = vld [vmem:[#allocation7 + $0x208] sm:$0xff] }
  0x7d   :  { %491 = vmatpush2.msra.mxu0 %v340_v32  ;;  %v294_v32 = vld [vmem:[#allocation7 + $0x88] sm:$0xff] }
  0x7e   :  { %492 = vmatprep.subr.mxu0 %v338_v33  ;;  %v396_v33 = vld [vmem:[#allocation7 + $0x3b8] sm:$0xff] }
  0x7f   :  { %493 = vmatpush2.msra.mxu0 %v337_v34  ;;  %v339_v34 = vld [vmem:[#allocation7 + $0x1f0] sm:$0xff] }
  0x80   :  { %494 = vmatprep.subr.mxu0 %v335_v35  ;;  %v291_v35 = vld [vmem:[#allocation7 + $0x70] sm:$0xff] }
  0x81   :  { %495 = vmatpush2.msra.mxu0 %v334_v37  ;;  %v336_v37 = vld [vmem:[#allocation7 + $0x1d8] sm:$0xff] }
  0x82   :  { %496 = vmatprep.subr.mxu0 %v332_v39  ;;  %v390_v39 = vld [vmem:[#allocation7 + $0x388] sm:$0xff] }
  0x83   :  { %497 = vmatpush2.msra.mxu0 %v331_v41  ;;  %v285_v41 = vld [vmem:[#allocation7 + $0x40] sm:$0xff] }
  0x84   :  { %498 = vmatprep.subr.mxu0 %v329_v43  ;;  %v330_v43 = vld [vmem:[#allocation7 + $0x1a8] sm:$0xff] }
  0x85   :  { %499 = vmatpush2.msra.mxu0 %v328_v45  ;;  %v384_v45 = vld [vmem:[#allocation7 + $0x358] sm:$0xff] }
  0x86   :  { %500 = vmatprep.subr.mxu0 %v326_v46  ;;  %v327_v46 = vld [vmem:[#allocation7 + $0x190] sm:$0xff] }
  0x87   :  { %501 = vmatpush2.msra.mxu0 %v325_v47  ;;  %v279_v47 = vld [vmem:[#allocation7 + $0x10] sm:$0xff] }
  0x88   :  { %1570 = vmatprep.subr.mxu0 %v1828_v0 }
 0x107   :  { %v270_v56 = vpop.f32.mrf.mxu1  ;;  %v199_v59 = vpop.f32.mrf.mxu0 }
 0x108   :  { %v1927_v58 = vadd.f32 %v270_v56, %v125_v54  ;;  %v1929_v60 = vadd.f32 %v199_v59, %v117_v55  ;;  %v769_v54 = vld [vmem:[#allocation8 + $0x170] sm:$0xff]  ;;  %v768_v55 = vld [vmem:[#allocation8 + $0x168] sm:$0xff] }
 0x109   :  { %v1569_v61 = vpop.f32.mrf.mxu1  ;;  %v201_v63 = vpop.f32.mrf.mxu0  ;;  %v375_v56 = vld [vmem:[#allocation7 + $0x310] sm:$0xff] }
 0x10a   :  { %v276_v62 = vmax.f32 %v1927_v58, 0.0  ;;  %v202_v2 = vadd.f32 %v201_v63, %v121_v57  ;;  %v274_v5 = vmax.f32 %v1929_v60, 0.0  ;;  %v766_v57 = vld [vmem:[#allocation8 + $0x158] sm:$0xff]  ;;  %v765_v59 = vld [vmem:[#allocation8 + $0x150] sm:$0xff]  ;;  %v763_v61 = vld [vmem:[#allocation8 + $0x140] sm:$0xff] }
 0x10b   :  { %v762_v63 = vld [vmem:[#allocation8 + $0x138] sm:$0xff]  ;;  %v760_v60 = vld [vmem:[#allocation8 + $0x128] sm:$0xff] }
 0x10c   :  { %574 = vmatmul.mubr.f32.vlgmr.msra.gmra.mxu1 %v276_v62  ;;  %v275_v6 = vmax.f32 %v202_v2, 0.0  ;;  %v757_v2 = vld [vmem:[#allocation8 + $0x110] sm:$0xff]  ;;  %v748_v58 = vld [vmem:[#allocation8 + $0xc8] sm:$0xff] }
 0x10d   :  { %1404 = vmatpush3.msra.mxu1 %v324_v1  ;;  %v759_v1 = vld [vmem:[#allocation8 + $0x120] sm:$0xff] }
 0x10e   :  { %1405 = vmatprep.subr.mxu1 %v369_v3  ;;  %502 = vmatprep.mubr.f32.mxu0 %v275_v6  ;;  %v756_v3 = vld [vmem:[#allocation8 + $0x108] sm:$0xff] }
 0x10f   :  { %1406 = vmatpush3.msra.mxu1 %v321_v4  ;;  %644 = vmatprep.mubr.f32.mxu1 %v275_v6  ;;  %v754_v4 = vld [vmem:[#allocation8 + $0xf8] sm:$0xff]  ;;  %v751_v6 = vld [vmem:[#allocation8 + $0xe0] sm:$0xff] }
 0x110   :  { %1407 = vmatprep.subr.mxu1 %v366_v7  ;;  %503 = vmatmul.mubr.f32.vlgmr.msra.gmra.mxu0 %v274_v5  ;;  %v750_v7 = vld [vmem:[#allocation8 + $0xd8] sm:$0xff] }
 0x111   :  { %1408 = vmatpush3.msra.mxu1 %v318_v8  ;;  %1571 = vmatpush3.msra.mxu0 %v420_v9  ;;  %v745_v8 = vld [vmem:[#allocation8 + $0xb0] sm:$0xff]  ;;  %v744_v9 = vld [vmem:[#allocation8 + $0xa8] sm:$0xff] }
 0x112   :  { %1409 = vmatprep.subr.mxu1 %v363_v10  ;;  %1572 = vmatprep.subr.mxu0 %v1828_v0  ;;  %v742_v10 = vld [vmem:[#allocation8 + $0x98] sm:$0xff] }
 0x113   :  { %1410 = vmatpush3.msra.mxu1 %v315_v11  ;;  %1573 = vmatpush3.msra.mxu0 %v417_v12  ;;  %v741_v11 = vld [vmem:[#allocation8 + $0x90] sm:$0xff]  ;;  %v739_v12 = vld [vmem:[#allocation8 + $0x80] sm:$0xff] }
 0x114   :  { %1411 = vmatprep.subr.mxu1 %v360_v13  ;;  %1574 = vmatprep.subr.mxu0 %v1828_v0  ;;  %v738_v13 = vld [vmem:[#allocation8 + $0x78] sm:$0xff] }
 0x115   :  { %1412 = vmatpush3.msra.mxu1 %v312_v14  ;;  %1575 = vmatpush3.msra.mxu0 %v414_v15  ;;  %v736_v14 = vld [vmem:[#allocation8 + $0x68] sm:$0xff]  ;;  %v735_v15 = vld [vmem:[#allocation8 + $0x60] sm:$0xff] }
 0x116   :  { %1413 = vmatprep.subr.mxu1 %v357_v16  ;;  %1576 = vmatprep.subr.mxu0 %v1828_v0  ;;  %v733_v16 = vld [vmem:[#allocation8 + $0x50] sm:$0xff] }
 0x117   :  { %1414 = vmatpush3.msra.mxu1 %v309_v17  ;;  %1577 = vmatpush3.msra.mxu0 %v411_v18  ;;  %v732_v17 = vld [vmem:[#allocation8 + $0x48] sm:$0xff]  ;;  %v730_v18 = vld [vmem:[#allocation8 + $0x38] sm:$0xff] }
 0x118   :  { %1415 = vmatprep.subr.mxu1 %v354_v19  ;;  %1578 = vmatprep.subr.mxu0 %v1828_v0  ;;  %v729_v19 = vld [vmem:[#allocation8 + $0x30] sm:$0xff] }
 0x119   :  { %1416 = vmatpush3.msra.mxu1 %v306_v20  ;;  %1579 = vmatpush3.msra.mxu0 %v408_v21  ;;  %v727_v20 = vld [vmem:[#allocation8 + $0x20] sm:$0xff]  ;;  %v726_v21 = vld [vmem:[#allocation8 + $0x18] sm:$0xff] }
 0x11a   :  { %1417 = vmatprep.subr.mxu1 %v351_v22  ;;  %1580 = vmatprep.subr.mxu0 %v1828_v0  ;;  %v724_v22 = vld [vmem:[#allocation8 + $0x8] sm:$0xff] }
 0x11b   :  { %1418 = vmatpush3.msra.mxu1 %v303_v23  ;;  %1581 = vmatpush3.msra.mxu0 %v405_v24  ;;  %v723_v23 = vld [vmem:[#allocation8] sm:$0xff]  ;;  %v817_v24 = vld [vmem:[#allocation8 + $0x2f0] sm:$0xff] }
 0x11c   :  { %1419 = vmatprep.subr.mxu1 %v348_v25  ;;  %1582 = vmatprep.subr.mxu0 %v1828_v0  ;;  %v816_v25 = vld [vmem:[#allocation8 + $0x2e8] sm:$0xff] }
 0x11d   :  { %1420 = vmatpush3.msra.mxu1 %v300_v26  ;;  %1583 = vmatpush3.msra.mxu0 %v402_v27  ;;  %v814_v26 = vld [vmem:[#allocation8 + $0x2d8] sm:$0xff]  ;;  %v813_v27 = vld [vmem:[#allocation8 + $0x2d0] sm:$0xff] }
 0x11e   :  { %1421 = vmatprep.subr.mxu1 %v345_v28  ;;  %1584 = vmatprep.subr.mxu0 %v1828_v0  ;;  %v811_v28 = vld [vmem:[#allocation8 + $0x2c0] sm:$0xff] }
 0x11f   :  { %1422 = vmatpush3.msra.mxu1 %v297_v29  ;;  %1585 = vmatpush3.msra.mxu0 %v399_v30  ;;  %v810_v29 = vld [vmem:[#allocation8 + $0x2b8] sm:$0xff]  ;;  %v808_v30 = vld [vmem:[#allocation8 + $0x2a8] sm:$0xff] }
 0x120   :  { %1423 = vmatprep.subr.mxu1 %v342_v31  ;;  %1586 = vmatprep.subr.mxu0 %v1828_v0  ;;  %v807_v31 = vld [vmem:[#allocation8 + $0x2a0] sm:$0xff] }
 0x121   :  { %1424 = vmatpush3.msra.mxu1 %v294_v32  ;;  %1587 = vmatpush3.msra.mxu0 %v396_v33  ;;  %v805_v32 = vld [vmem:[#allocation8 + $0x290] sm:$0xff]  ;;  %v804_v33 = vld [vmem:[#allocation8 + $0x288] sm:$0xff] }
 0x122   :  { %1425 = vmatprep.subr.mxu1 %v339_v34  ;;  %1588 = vmatprep.subr.mxu0 %v1828_v0  ;;  %v802_v34 = vld [vmem:[#allocation8 + $0x278] sm:$0xff] }
 0x123   :  { %1426 = vmatpush3.msra.mxu1 %v291_v35  ;;  %1589 = vmatpush3.msra.mxu0 %v393_v36  ;;  %v801_v35 = vld [vmem:[#allocation8 + $0x270] sm:$0xff] }
 0x124   :  { %1427 = vmatprep.subr.mxu1 %v336_v37  ;;  %1590 = vmatprep.subr.mxu0 %v1828_v0  ;;  %v865_v36 = vld [vmem:[#allocation8 + $0x470] sm:$0xff]  ;;  %v799_v37 = vld [vmem:[#allocation8 + $0x260] sm:$0xff] }
 0x125   :  { %1428 = vmatpush3.msra.mxu1 %v288_v38  ;;  %1591 = vmatpush3.msra.mxu0 %v390_v39  ;;  %v864_v38 = vld [vmem:[#allocation8 + $0x468] sm:$0xff]  ;;  %v798_v39 = vld [vmem:[#allocation8 + $0x258] sm:$0xff] }
 0x126   :  { %1429 = vmatprep.subr.mxu1 %v333_v40  ;;  %1592 = vmatprep.subr.mxu0 %v1828_v0  ;;  %v862_v40 = vld [vmem:[#allocation8 + $0x458] sm:$0xff] }
 0x127   :  { %1430 = vmatpush3.msra.mxu1 %v285_v41  ;;  %1593 = vmatpush3.msra.mxu0 %v387_v42  ;;  %v796_v41 = vld [vmem:[#allocation8 + $0x248] sm:$0xff]  ;;  %v861_v42 = vld [vmem:[#allocation8 + $0x450] sm:$0xff] }
 0x128   :  { %1431 = vmatprep.subr.mxu1 %v330_v43  ;;  %1594 = vmatprep.subr.mxu0 %v1828_v0  ;;  %v795_v43 = vld [vmem:[#allocation8 + $0x240] sm:$0xff] }
 0x129   :  { %1432 = vmatpush3.msra.mxu1 %v282_v44  ;;  %1595 = vmatpush3.msra.mxu0 %v384_v45  ;;  %v859_v44 = vld [vmem:[#allocation8 + $0x440] sm:$0xff]  ;;  %v793_v45 = vld [vmem:[#allocation8 + $0x230] sm:$0xff] }
 0x12a   :  { %1433 = vmatprep.subr.mxu1 %v327_v46  ;;  %1596 = vmatprep.subr.mxu0 %v1828_v0  ;;  %v858_v46 = vld [vmem:[#allocation8 + $0x438] sm:$0xff] }
 0x12b   :  { %1434 = vmatpush3.msra.mxu1 %v279_v47  ;;  %1597 = vmatpush3.msra.mxu0 %v381_v49  ;;  %v792_v47 = vld [vmem:[#allocation8 + $0x228] sm:$0xff] }
 0x12c   :  { %645 = vmatmul.mubr.f32.vlgmr.msra.gmra.mxu1 %v274_v5  ;;  %1598 = vmatprep.subr.mxu0 %v1828_v0  ;;  %v753_v5 = vld [vmem:[#allocation8 + $0xf0] sm:$0xff]  ;;  %v856_v49 = vld [vmem:[#allocation8 + $0x428] sm:$0xff] }
 0x12d   :  { %1602 = vmatprep.mubr.msk.f32.mxu0 %vm1829_vm0, %v1828_v0  ;;  %1599 = vmatpush3.msra.mxu0 %v378_v51  ;;  %v790_v51 = vld [vmem:[#allocation8 + $0x218] sm:$0xff] }
 0x12e   :  { %884 = vmatprep.subr.mxu1 %v769_v54  ;;  %1600 = vmatprep.subr.mxu0 %v1828_v0  ;;  %v855_v54 = vld [vmem:[#allocation8 + $0x420] sm:$0xff] }
 0x12f   :  { %885 = vmatpush1.msra.mxu1 %v768_v55  ;;  %1601 = vmatpush3.msra.mxu0 %v375_v56  ;;  %v789_v55 = vld [vmem:[#allocation8 + $0x210] sm:$0xff] }
 0x130   :  { %886 = vmatprep.subr.mxu1 %v766_v57  ;;  %1603 = vmatmul.mubr.f32.vlgmr.msra.gmra.mxu0 %v276_v62  ;;  %v747_v62 = vld [vmem:[#allocation8 + $0xc0] sm:$0xff]  ;;  %v853_v56 = vld [vmem:[#allocation8 + $0x410] sm:$0xff] }
 0x131   :  { %887 = vmatpush1.msra.mxu1 %v765_v59  ;;  %1019 = vmatprep.mubr.f32.mxu0 %v1828_v0  ;;  %v787_v57 = vld [vmem:[#allocation8 + $0x200] sm:$0xff]  ;;  %v852_v59 = vld [vmem:[#allocation8 + $0x408] sm:$0xff] }
 0x132   :  { %888 = vmatprep.subr.mxu1 %v763_v61  ;;  %955 = vmatprep.subr.mxu0 %v865_v36  ;;  %v786_v61 = vld [vmem:[#allocation8 + $0x1f8] sm:$0xff] }
 0x133   :  { %889 = vmatpush1.msra.mxu1 %v762_v63  ;;  %956 = vmatpush1.msra.mxu0 %v864_v38  ;;  %v850_v63 = vld [vmem:[#allocation8 + $0x3f8] sm:$0xff] }
 0x134   :  { %890 = vmatprep.subr.mxu1 %v760_v60  ;;  %957 = vmatprep.subr.mxu0 %v862_v40  ;;  %v784_v60 = vld [vmem:[#allocation8 + $0x1e8] sm:$0xff] }
 0x135   :  { %891 = vmatpush1.msra.mxu1 %v759_v1  ;;  %958 = vmatpush1.msra.mxu0 %v861_v42  ;;  %v849_v1 = vld [vmem:[#allocation8 + $0x3f0] sm:$0xff] }
 0x136   :  { %892 = vmatprep.subr.mxu1 %v757_v2  ;;  %959 = vmatprep.subr.mxu0 %v859_v44  ;;  %v783_v2 = vld [vmem:[#allocation8 + $0x1e0] sm:$0xff] }
 0x137   :  { %893 = vmatpush1.msra.mxu1 %v756_v3  ;;  %960 = vmatpush1.msra.mxu0 %v858_v46  ;;  %v847_v3 = vld [vmem:[#allocation8 + $0x3e0] sm:$0xff]  ;;  %v857_v46 = vld [vmem:[#allocation8 + $0x430] sm:$0xff] }
 0x138   :  { %894 = vmatprep.subr.mxu1 %v754_v4  ;;  %961 = vmatprep.subr.mxu0 %v856_v49  ;;  %v781_v4 = vld [vmem:[#allocation8 + $0x1d0] sm:$0xff]  ;;  %v863_v44 = vld [vmem:[#allocation8 + $0x460] sm:$0xff] }
 0x139   :  { %895 = vmatpush1.msra.mxu1 %v753_v5  ;;  %962 = vmatpush1.msra.mxu0 %v855_v54  ;;  %v846_v5 = vld [vmem:[#allocation8 + $0x3d8] sm:$0xff]  ;;  %v851_v49 = vld [vmem:[#allocation8 + $0x400] sm:$0xff]  ;;  %v845_v54 = vld [vmem:[#allocation8 + $0x3d0] sm:$0xff] }
 0x13a   :  { %896 = vmatprep.subr.mxu1 %v751_v6  ;;  %963 = vmatprep.subr.mxu0 %v853_v56  ;;  %v780_v6 = vld [vmem:[#allocation8 + $0x1c8] sm:$0xff]  ;;  %v839_v56 = vld [vmem:[#allocation8 + $0x3a0] sm:$0xff] }
 0x13b   :  { %897 = vmatpush1.msra.mxu1 %v750_v7  ;;  %964 = vmatpush1.msra.mxu0 %v852_v59  ;;  %v844_v7 = vld [vmem:[#allocation8 + $0x3c8] sm:$0xff] }
 0x13c   :  { %898 = vmatprep.subr.mxu1 %v748_v58  ;;  %965 = vmatprep.subr.mxu0 %v850_v63  ;;  %v778_v58 = vld [vmem:[#allocation8 + $0x1b8] sm:$0xff]  ;;  %v836_v59 = vld [vmem:[#allocation8 + $0x388] sm:$0xff] }
 0x13d   :  { %899 = vmatpush1.msra.mxu1 %v747_v62  ;;  %966 = vmatpush1.msra.mxu0 %v849_v1  ;;  %v843_v62 = vld [vmem:[#allocation8 + $0x3c0] sm:$0xff]  ;;  %v833_v1 = vld [vmem:[#allocation8 + $0x370] sm:$0xff] }
 0x13e   :  { %900 = vmatprep.subr.mxu1 %v745_v8  ;;  %967 = vmatprep.subr.mxu0 %v847_v3  ;;  %v777_v8 = vld [vmem:[#allocation8 + $0x1b0] sm:$0xff] }
 0x13f   :  { %901 = vmatpush1.msra.mxu1 %v744_v9  ;;  %968 = vmatpush1.msra.mxu0 %v846_v5  ;;  %v841_v9 = vld [vmem:[#allocation8 + $0x3b0] sm:$0xff] }
 0x140   :  { %902 = vmatprep.subr.mxu1 %v742_v10  ;;  %969 = vmatprep.subr.mxu0 %v844_v7  ;;  %v775_v10 = vld [vmem:[#allocation8 + $0x1a0] sm:$0xff] }
 0x141   :  { %903 = vmatpush1.msra.mxu1 %v741_v11  ;;  %970 = vmatpush1.msra.mxu0 %v843_v62  ;;  %v840_v11 = vld [vmem:[#allocation8 + $0x3a8] sm:$0xff]  ;;  %v827_v7 = vld [vmem:[#allocation8 + $0x340] sm:$0xff]  ;;  %v770_v62 = vld [vmem:[#allocation8 + $0x178] sm:$0xff] }
 0x142   :  { %904 = vmatprep.subr.mxu1 %v739_v12  ;;  %971 = vmatprep.subr.mxu0 %v841_v9  ;;  %v774_v12 = vld [vmem:[#allocation8 + $0x198] sm:$0xff]  ;;  %v815_v9 = vld [vmem:[#allocation8 + $0x2e0] sm:$0xff] }
 0x143   :  { %905 = vmatpush1.msra.mxu1 %v738_v13  ;;  %972 = vmatpush1.msra.mxu0 %v840_v11  ;;  %v838_v13 = vld [vmem:[#allocation8 + $0x398] sm:$0xff]  ;;  %v821_v11 = vld [vmem:[#allocation8 + $0x310] sm:$0xff] }
 0x144   :  { %906 = vmatprep.subr.mxu1 %v736_v14  ;;  %v772_v14 = vld [vmem:[#allocation8 + $0x188] sm:$0xff]  ;;  %973 = vmatprep.subr.mxu0 %v838_v13 }
 0x145   :  { %907 = vmatpush1.msra.mxu1 %v735_v15  ;;  %v837_v15 = vld [vmem:[#allocation8 + $0x390] sm:$0xff]  ;;  %v764_v13 = vld [vmem:[#allocation8 + $0x148] sm:$0xff] }
 0x146   :  { %908 = vmatprep.subr.mxu1 %v733_v16  ;;  %v771_v16 = vld [vmem:[#allocation8 + $0x180] sm:$0xff]  ;;  %974 = vmatpush1.msra.mxu0 %v837_v15  ;;  %v761_v15 = vld [vmem:[#allocation8 + $0x130] sm:$0xff] }
 0x147   :  { %909 = vmatpush1.msra.mxu1 %v732_v17  ;;  %v835_v17 = vld [vmem:[#allocation8 + $0x380] sm:$0xff] }
 0x148   :  { %910 = vmatprep.subr.mxu1 %v730_v18  ;;  %975 = vmatprep.subr.mxu0 %v835_v17  ;;  %v834_v18 = vld [vmem:[#allocation8 + $0x378] sm:$0xff] }
 0x149   :  { %911 = vmatpush1.msra.mxu1 %v729_v19  ;;  %976 = vmatpush1.msra.mxu0 %v834_v18  ;;  %v832_v19 = vld [vmem:[#allocation8 + $0x368] sm:$0xff]  ;;  %v758_v17 = vld [vmem:[#allocation8 + $0x118] sm:$0xff]  ;;  %v803_v18 = vld [vmem:[#allocation8 + $0x280] sm:$0xff] }
 0x14a   :  { %912 = vmatprep.subr.mxu1 %v727_v20  ;;  %977 = vmatprep.subr.mxu0 %v832_v19  ;;  %v831_v20 = vld [vmem:[#allocation8 + $0x360] sm:$0xff] }
 0x14b   :  { %913 = vmatpush1.msra.mxu1 %v726_v21  ;;  %978 = vmatpush1.msra.mxu0 %v831_v20  ;;  %v829_v21 = vld [vmem:[#allocation8 + $0x350] sm:$0xff]  ;;  %v755_v19 = vld [vmem:[#allocation8 + $0x100] sm:$0xff]  ;;  %v800_v20 = vld [vmem:[#allocation8 + $0x268] sm:$0xff] }
 0x14c   :  { %914 = vmatprep.subr.mxu1 %v724_v22  ;;  %979 = vmatprep.subr.mxu0 %v829_v21  ;;  %v828_v22 = vld [vmem:[#allocation8 + $0x348] sm:$0xff] }
 0x14d   :  { %915 = vmatpush1.msra.mxu1 %v723_v23  ;;  %980 = vmatpush1.msra.mxu0 %v828_v22  ;;  %v826_v23 = vld [vmem:[#allocation8 + $0x338] sm:$0xff]  ;;  %v752_v21 = vld [vmem:[#allocation8 + $0xe8] sm:$0xff]  ;;  %v797_v22 = vld [vmem:[#allocation8 + $0x250] sm:$0xff] }
 0x14e   :  { %916 = vmatprep.subr.mxu1 %v817_v24  ;;  %981 = vmatprep.subr.mxu0 %v826_v23  ;;  %v825_v24 = vld [vmem:[#allocation8 + $0x330] sm:$0xff] }
 0x14f   :  { %917 = vmatpush2.msra.mxu1 %v816_v25  ;;  %982 = vmatpush1.msra.mxu0 %v825_v24  ;;  %v823_v25 = vld [vmem:[#allocation8 + $0x320] sm:$0xff]  ;;  %v749_v23 = vld [vmem:[#allocation8 + $0xd0] sm:$0xff]  ;;  %v794_v24 = vld [vmem:[#allocation8 + $0x238] sm:$0xff] }
 0x150   :  { %918 = vmatprep.subr.mxu1 %v814_v26  ;;  %983 = vmatprep.subr.mxu0 %v823_v25  ;;  %v822_v26 = vld [vmem:[#allocation8 + $0x318] sm:$0xff] }
 0x151   :  { %919 = vmatpush2.msra.mxu1 %v813_v27  ;;  %984 = vmatpush1.msra.mxu0 %v822_v26  ;;  %v820_v27 = vld [vmem:[#allocation8 + $0x308] sm:$0xff]  ;;  %v746_v25 = vld [vmem:[#allocation8 + $0xb8] sm:$0xff]  ;;  %v791_v26 = vld [vmem:[#allocation8 + $0x220] sm:$0xff] }
 0x152   :  { %920 = vmatprep.subr.mxu1 %v811_v28  ;;  %985 = vmatprep.subr.mxu0 %v820_v27  ;;  %v819_v28 = vld [vmem:[#allocation8 + $0x300] sm:$0xff] }
 0x153   :  { %921 = vmatpush2.msra.mxu1 %v810_v29  ;;  %986 = vmatpush1.msra.mxu0 %v819_v28  ;;  %v818_v29 = vld [vmem:[#allocation8 + $0x2f8] sm:$0xff]  ;;  %v743_v27 = vld [vmem:[#allocation8 + $0xa0] sm:$0xff]  ;;  %v788_v28 = vld [vmem:[#allocation8 + $0x208] sm:$0xff] }
 0x154   :  { %922 = vmatprep.subr.mxu1 %v808_v30  ;;  %1455 = vmatprep.subr.mxu0 %v818_v29  ;;  %v421_v30 = vld [vmem:[%s2032_s4] sm:$0x7]  ;;  %v740_v29 = vld [vmem:[#allocation8 + $0x88] sm:$0xff] }
 0x155   :  { %923 = vmatpush2.msra.mxu1 %v807_v31  ;;  %v426_v31 = vrot.slane %v421_v30, %v1920_v52 }
 0x156   :  { %924 = vmatprep.subr.mxu1 %v805_v32  ;;  %v430_v32 = vrot.slane %v421_v30, %v1922_v53 }
 0x157   :  { %925 = vmatpush2.msra.mxu1 %v804_v33 }
 0x158   :  { %926 = vmatprep.subr.mxu1 %v802_v34 }
 0x159   :  { %927 = vmatpush2.msra.mxu1 %v801_v35 }
 0x15a   :  { %928 = vmatprep.subr.mxu1 %v799_v37 }
 0x15b   :  { %929 = vmatpush2.msra.mxu1 %v798_v39 }
 0x15c   :  { %930 = vmatprep.subr.mxu1 %v796_v41 }
 0x15d   :  { %931 = vmatpush2.msra.mxu1 %v795_v43  ;;  %v866_v43 = vld [vmem:[#allocation8 + $0x478] sm:$0xff] }
 0x15e   :  { %932 = vmatprep.subr.mxu1 %v793_v45  ;;  %v860_v45 = vld [vmem:[#allocation8 + $0x448] sm:$0xff] }
 0x15f   :  { %933 = vmatpush2.msra.mxu1 %v792_v47  ;;  %v854_v47 = vld [vmem:[#allocation8 + $0x418] sm:$0xff] }
 0x160   :  { %934 = vmatprep.subr.mxu1 %v790_v51  ;;  %v848_v51 = vld [vmem:[#allocation8 + $0x3e8] sm:$0xff] }
 0x161   :  { %935 = vmatpush2.msra.mxu1 %v789_v55  ;;  %v842_v55 = vld [vmem:[#allocation8 + $0x3b8] sm:$0xff] }
 0x162   :  { %936 = vmatprep.subr.mxu1 %v787_v57 }
 0x163   :  { %937 = vmatpush2.msra.mxu1 %v786_v61  ;;  %v434_v61 = vrot.slane %v421_v30, %v1915_v50  ;;  %v785_v30 = vld [vmem:[#allocation8 + $0x1f0] sm:$0xff] }
 0x164   :  { %938 = vmatprep.subr.mxu1 %v784_v60 }
 0x165   :  { %939 = vmatpush2.msra.mxu1 %v783_v2 }
 0x166   :  { %940 = vmatprep.subr.mxu1 %v781_v4  ;;  %v830_v4 = vld [vmem:[#allocation8 + $0x358] sm:$0xff] }
 0x167   :  { %941 = vmatpush2.msra.mxu1 %v780_v6 }
 0x168   :  { %942 = vmatprep.subr.mxu1 %v778_v58 }
 0x169   :  { %943 = vmatpush2.msra.mxu1 %v777_v8  ;;  %v824_v8 = vld [vmem:[#allocation8 + $0x328] sm:$0xff] }
 0x16a   :  { %944 = vmatprep.subr.mxu1 %v775_v10  ;;  %v767_v10 = vld [vmem:[#allocation8 + $0x160] sm:$0xff] }
 0x16b   :  { %945 = vmatpush2.msra.mxu1 %v774_v12  ;;  %v812_v12 = vld [vmem:[#allocation8 + $0x2c8] sm:$0xff] }
 0x16c   :  { %946 = vmatprep.subr.mxu1 %v772_v14  ;;  %v809_v14 = vld [vmem:[#allocation8 + $0x2b0] sm:$0xff] }
 0x16d   :  { %947 = vmatpush2.msra.mxu1 %v771_v16  ;;  %v806_v16 = vld [vmem:[#allocation8 + $0x298] sm:$0xff] }
 0x16e   :  { %1605 = vmatprep.subr.mxu1 %v1828_v0 }
 0x1cc   :  { %v575_v33 = vpop.f32.mrf.mxu1 }
 0x1ce   :  { %v577_v38 = vpop.f32.mrf.mxu1 }
 0x1d0   :  { %v504_v34 = vpop.f32.mrf.mxu0 }
 0x1d1   :  { %v505_v35 = vadd.f32 %v504_v34, %v426_v31  ;;  %v737_v31 = vld [vmem:[#allocation8 + $0x70] sm:$0xff]  ;;  %v779_v34 = vld [vmem:[#allocation8 + $0x1c0] sm:$0xff] }
 0x1d2   :  { %v506_v36 = vpop.f32.mrf.mxu0 }
 0x1d3   :  { %v507_v37 = vadd.f32 %v506_v36, %v430_v32  ;;  %v1965_v39 = vadd.f32 %v575_v33, %v505_v35  ;;  %v782_v32 = vld [vmem:[#allocation8 + $0x1d8] sm:$0xff]  ;;  %v731_v35 = vld [vmem:[#allocation8 + $0x40] sm:$0xff]  ;;  %v776_v36 = vld [vmem:[#allocation8 + $0x1a8] sm:$0xff] }
 0x1d4   :  { %v734_v33 = vld [vmem:[#allocation8 + $0x58] sm:$0xff] }
 0x1d5   :  { %v1967_v40 = vadd.f32 %v577_v38, %v507_v37  ;;  %v720_v42 = vmax.f32 %v1965_v39, 0.0  ;;  %v728_v37 = vld [vmem:[#allocation8 + $0x28] sm:$0xff]  ;;  %v773_v38 = vld [vmem:[#allocation8 + $0x190] sm:$0xff] }
 0x1d6   :  { %v1195_v39 = vld [vmem:[#allocation10 + $0xd0] sm:$0xff] }
 0x1d7   :  { %v721_v41 = vmax.f32 %v1967_v40, 0.0  ;;  %v725_v40 = vld [vmem:[#allocation8 + $0x10] sm:$0xff] }
 0x1d9   :  { %948 = vmatprep.mubr.f32.mxu1 %v721_v41 }
 0x1da   :  { %949 = vmatmul.mubr.f32.vlgmr.msra.gmra.mxu1 %v720_v42 }
 0x1db   :  { %1606 = vmatpush3.msra.mxu1 %v866_v43  ;;  %1637 = vmatprep.mubr.msk.f32.mxu1 %vm1829_vm0, %v1828_v0  ;;  %v1184_v43 = vld [vmem:[#allocation10 + $0x78] sm:$0xff] }
 0x1dc   :  { %1607 = vmatprep.subr.mxu1 %v1828_v0 }
 0x1dd   :  { %1608 = vmatpush3.msra.mxu1 %v863_v44  ;;  %v1199_v44 = vld [vmem:[#allocation10 + $0xf0] sm:$0xff] }
 0x1de   :  { %1609 = vmatprep.subr.mxu1 %v1828_v0 }
 0x1df   :  { %1610 = vmatpush3.msra.mxu1 %v860_v45  ;;  %v1183_v45 = vld [vmem:[#allocation10 + $0x70] sm:$0xff] }
 0x1e0   :  { %1611 = vmatprep.subr.mxu1 %v1828_v0 }
 0x1e1   :  { %1612 = vmatpush3.msra.mxu1 %v857_v46  ;;  %v1198_v46 = vld [vmem:[#allocation10 + $0xe8] sm:$0xff] }
 0x1e2   :  { %1613 = vmatprep.subr.mxu1 %v1828_v0 }
 0x1e3   :  { %1614 = vmatpush3.msra.mxu1 %v854_v47  ;;  %v1182_v47 = vld [vmem:[#allocation10 + $0x68] sm:$0xff] }
 0x1e4   :  { %1615 = vmatprep.subr.mxu1 %v1828_v0 }
 0x1e5   :  { %1616 = vmatpush3.msra.mxu1 %v851_v49  ;;  %v1197_v49 = vld [vmem:[#allocation10 + $0xe0] sm:$0xff] }
 0x1e6   :  { %1617 = vmatprep.subr.mxu1 %v1828_v0 }
 0x1e7   :  { %1618 = vmatpush3.msra.mxu1 %v848_v51  ;;  %v1181_v51 = vld [vmem:[#allocation10 + $0x60] sm:$0xff] }
 0x1e8   :  { %1619 = vmatprep.subr.mxu1 %v1828_v0 }
 0x1e9   :  { %1620 = vmatpush3.msra.mxu1 %v845_v54  ;;  %v1196_v54 = vld [vmem:[#allocation10 + $0xd8] sm:$0xff] }
 0x1ea   :  { %1621 = vmatprep.subr.mxu1 %v1828_v0 }
 0x1eb   :  { %1622 = vmatpush3.msra.mxu1 %v842_v55  ;;  %v1180_v55 = vld [vmem:[#allocation10 + $0x58] sm:$0xff] }
 0x1ec   :  { %v1435_v57 = vpop.f32.mrf.mxu1  ;;  %1623 = vmatprep.subr.mxu1 %v1828_v0 }
 0x1ed   :  { %1624 = vmatpush3.msra.mxu1 %v839_v56  ;;  %v1194_v56 = vld [vmem:[#allocation10 + $0xc8] sm:$0xff] }
 0x1ee   :  { %v1436_v63 = vpop.f32.mrf.mxu1  ;;  %1625 = vmatprep.subr.mxu1 %v1828_v0 }
 0x1ef   :  { %v1437_v60 = vadd.f32 %v1436_v63, %v1435_v57  ;;  %1626 = vmatpush3.msra.mxu1 %v836_v59  ;;  %v1178_v57 = vld [vmem:[#allocation10 + $0x48] sm:$0xff]  ;;  %v1193_v59 = vld [vmem:[#allocation10 + $0xc0] sm:$0xff]  ;;  %v1192_v63 = vld [vmem:[#allocation10 + $0xb8] sm:$0xff] }
 0x1f0   :  { %v716_v3 = vpop.f32.mrf.mxu0  ;;  %1627 = vmatprep.subr.mxu1 %v1828_v0 }
 0x1f1   :  { %v647_v2 = vadd.f32 %v1437_v60, %v434_v61  ;;  %1628 = vmatpush3.msra.mxu1 %v833_v1  ;;  %v1177_v61 = vld [vmem:[#allocation10 + $0x40] sm:$0xff]  ;;  %v1176_v60 = vld [vmem:[#allocation10 + $0x38] sm:$0xff]  ;;  %v1191_v1 = vld [vmem:[#allocation10 + $0xb0] sm:$0xff] }
 0x1f2   :  { %v1604_v6 = vpop.f32.mrf.mxu0  ;;  %1629 = vmatprep.subr.mxu1 %v1828_v0 }
 0x1f3   :  { %v717_v5 = vadd.f32 %v716_v3, %v647_v2  ;;  %1630 = vmatpush3.msra.mxu1 %v830_v4  ;;  %v1175_v2 = vld [vmem:[#allocation10 + $0x30] sm:$0xff]  ;;  %v1190_v3 = vld [vmem:[#allocation10 + $0xa8] sm:$0xff]  ;;  %v1173_v6 = vld [vmem:[#allocation10 + $0x20] sm:$0xff] }
 0x1f4   :  { %1631 = vmatprep.subr.mxu1 %v1828_v0  ;;  %v1174_v4 = vld [vmem:[#allocation10 + $0x28] sm:$0xff] }
 0x1f5   :  { %v722_v58 = vmax.f32 %v717_v5, 0.0  ;;  %1632 = vmatpush3.msra.mxu1 %v827_v7  ;;  %v1189_v5 = vld [vmem:[#allocation10 + $0xa0] sm:$0xff]  ;;  %v1188_v7 = vld [vmem:[#allocation10 + $0x98] sm:$0xff] }
 0x1f6   :  { %1633 = vmatprep.subr.mxu1 %v1828_v0 }
 0x1f7   :  { %1020 = vmatmul.mubr.f32.vlgmr.msra.gmra.mxu0 %v722_v58  ;;  %1634 = vmatpush3.msra.mxu1 %v824_v8  ;;  %v1171_v8 = vld [vmem:[#allocation10 + $0x10] sm:$0xff] }
 0x1f8   :  { %1456 = vmatpush3.msra.mxu0 %v770_v62  ;;  %1090 = vmatprep.mubr.f32.mxu0 %v721_v41  ;;  %v1200_v41 = vld [vmem:[#allocation10 + $0xf8] sm:$0xff]  ;;  %v1187_v62 = vld [vmem:[#allocation10 + $0x90] sm:$0xff] }
 0x1f9   :  { %1457 = vmatprep.subr.mxu0 %v815_v9  ;;  %1635 = vmatprep.subr.mxu1 %v1828_v0  ;;  %v1186_v9 = vld [vmem:[#allocation10 + $0x88] sm:$0xff] }
 0x1fa   :  { %1458 = vmatpush3.msra.mxu0 %v767_v10  ;;  %1636 = vmatpush3.msra.mxu1 %v821_v11  ;;  %v1170_v10 = vld [vmem:[#allocation10 + $0x8] sm:$0xff]  ;;  %v1185_v11 = vld [vmem:[#allocation10 + $0x80] sm:$0xff] }
 0x1fb   :  { %1459 = vmatprep.subr.mxu0 %v812_v12  ;;  %1638 = vmatmul.mubr.f32.vlgmr.msra.gmra.mxu1 %v722_v58  ;;  %v1172_v58 = vld [vmem:[#allocation10 + $0x18] sm:$0xff]  ;;  %v1169_v12 = vld [vmem:[#allocation10] sm:$0xff] }
 0x1fc   :  { %1460 = vmatpush3.msra.mxu0 %v764_v13  ;;  %1640 = vmatprep.subr.mxu1 %v1828_v0  ;;  %v1216_v13 = vld [vmem:[#allocation10 + $0x178] sm:$0xff] }
 0x1fd   :  { %1461 = vmatprep.subr.mxu0 %v809_v14  ;;  %1672 = vmatprep.mubr.msk.f32.mxu1 %vm1829_vm0, %v1828_v0  ;;  %v1215_v14 = vld [vmem:[#allocation10 + $0x170] sm:$0xff] }
 0x1fe   :  { %1462 = vmatpush3.msra.mxu0 %v761_v15  ;;  %1641 = vmatpush3.msra.mxu1 %v1216_v13  ;;  %v1214_v15 = vld [vmem:[#allocation10 + $0x168] sm:$0xff] }
 0x1ff   :  { %1463 = vmatprep.subr.mxu0 %v806_v16  ;;  %1642 = vmatprep.subr.mxu1 %v1828_v0  ;;  %v1213_v16 = vld [vmem:[#allocation10 + $0x160] sm:$0xff] }
 0x200   :  { %1464 = vmatpush3.msra.mxu0 %v758_v17  ;;  %1643 = vmatpush3.msra.mxu1 %v1215_v14  ;;  %v1212_v17 = vld [vmem:[#allocation10 + $0x158] sm:$0xff] }
 0x201   :  { %1465 = vmatprep.subr.mxu0 %v803_v18  ;;  %1644 = vmatprep.subr.mxu1 %v1828_v0  ;;  %v1211_v18 = vld [vmem:[#allocation10 + $0x150] sm:$0xff] }
 0x202   :  { %1466 = vmatpush3.msra.mxu0 %v755_v19  ;;  %1645 = vmatpush3.msra.mxu1 %v1214_v15  ;;  %v1210_v19 = vld [vmem:[#allocation10 + $0x148] sm:$0xff] }
 0x203   :  { %1467 = vmatprep.subr.mxu0 %v800_v20  ;;  %1646 = vmatprep.subr.mxu1 %v1828_v0  ;;  %v1209_v20 = vld [vmem:[#allocation10 + $0x140] sm:$0xff] }
 0x204   :  { %1468 = vmatpush3.msra.mxu0 %v752_v21  ;;  %1647 = vmatpush3.msra.mxu1 %v1213_v16  ;;  %v1208_v21 = vld [vmem:[#allocation10 + $0x138] sm:$0xff] }
 0x205   :  { %1469 = vmatprep.subr.mxu0 %v797_v22  ;;  %1648 = vmatprep.subr.mxu1 %v1828_v0  ;;  %v1207_v22 = vld [vmem:[#allocation10 + $0x130] sm:$0xff] }
 0x206   :  { %1470 = vmatpush3.msra.mxu0 %v749_v23  ;;  %1649 = vmatpush3.msra.mxu1 %v1212_v17  ;;  %v1206_v23 = vld [vmem:[#allocation10 + $0x128] sm:$0xff] }
 0x207   :  { %1471 = vmatprep.subr.mxu0 %v794_v24  ;;  %1650 = vmatprep.subr.mxu1 %v1828_v0  ;;  %v1205_v24 = vld [vmem:[#allocation10 + $0x120] sm:$0xff] }
 0x208   :  { %1472 = vmatpush3.msra.mxu0 %v746_v25  ;;  %1651 = vmatpush3.msra.mxu1 %v1211_v18  ;;  %v1204_v25 = vld [vmem:[#allocation10 + $0x118] sm:$0xff] }
 0x209   :  { %1473 = vmatprep.subr.mxu0 %v791_v26  ;;  %1652 = vmatprep.subr.mxu1 %v1828_v0  ;;  %v1203_v26 = vld [vmem:[#allocation10 + $0x110] sm:$0xff] }
 0x20a   :  { %1474 = vmatpush3.msra.mxu0 %v743_v27  ;;  %1653 = vmatpush3.msra.mxu1 %v1210_v19  ;;  %v1202_v27 = vld [vmem:[#allocation10 + $0x108] sm:$0xff] }
 0x20b   :  { %1475 = vmatprep.subr.mxu0 %v788_v28  ;;  %1654 = vmatprep.subr.mxu1 %v1828_v0  ;;  %v1201_v28 = vld [vmem:[#allocation10 + $0x100] sm:$0xff] }
 0x20c   :  { %1476 = vmatpush3.msra.mxu0 %v740_v29  ;;  %1655 = vmatpush3.msra.mxu1 %v1209_v20  ;;  %v867_v29 = vld [vmem:[%s2034_s6] sm:$0x7] }
 0x20d   :  { %1477 = vmatprep.subr.mxu0 %v785_v30  ;;  %1656 = vmatprep.subr.mxu1 %v1828_v0 }
 0x20e   :  { %1478 = vmatpush3.msra.mxu0 %v737_v31  ;;  %1657 = vmatpush3.msra.mxu1 %v1208_v21  ;;  %v872_v31 = vrot.slane %v867_v29, %v1920_v52 }
 0x20f   :  { %1479 = vmatprep.subr.mxu0 %v782_v32  ;;  %1658 = vmatprep.subr.mxu1 %v1828_v0  ;;  %v876_v32 = vrot.slane %v867_v29, %v1922_v53 }
 0x210   :  { %1480 = vmatpush3.msra.mxu0 %v734_v33  ;;  %1659 = vmatpush3.msra.mxu1 %v1207_v22 }
 0x211   :  { %1481 = vmatprep.subr.mxu0 %v779_v34  ;;  %1660 = vmatprep.subr.mxu1 %v1828_v0 }
 0x212   :  { %1482 = vmatpush3.msra.mxu0 %v731_v35  ;;  %1661 = vmatpush3.msra.mxu1 %v1206_v23 }
 0x213   :  { %1483 = vmatprep.subr.mxu0 %v776_v36  ;;  %1662 = vmatprep.subr.mxu1 %v1828_v0 }
 0x214   :  { %1484 = vmatpush3.msra.mxu0 %v728_v37  ;;  %1663 = vmatpush3.msra.mxu1 %v1205_v24 }
 0x215   :  { %1485 = vmatprep.subr.mxu0 %v773_v38  ;;  %1664 = vmatprep.subr.mxu1 %v1828_v0 }
 0x216   :  { %1486 = vmatpush3.msra.mxu0 %v725_v40  ;;  %1665 = vmatpush3.msra.mxu1 %v1204_v25 }
 0x217   :  { %1091 = vmatmul.mubr.f32.vlgmr.msra.gmra.mxu0 %v720_v42  ;;  %1507 = vmatprep.subr.mxu0 %v1200_v41  ;;  %v1179_v42 = vld [vmem:[#allocation10 + $0x50] sm:$0xff] }
 0x218   :  { %1508 = vmatpush3.msra.mxu0 %v1184_v43  ;;  %1666 = vmatprep.subr.mxu1 %v1828_v0 }
 0x219   :  { %1509 = vmatprep.subr.mxu0 %v1199_v44  ;;  %1667 = vmatpush3.msra.mxu1 %v1203_v26 }
 0x21a   :  { %1510 = vmatpush3.msra.mxu0 %v1183_v45  ;;  %1668 = vmatprep.subr.mxu1 %v1828_v0 }
 0x21b   :  { %1511 = vmatprep.subr.mxu0 %v1198_v46  ;;  %1669 = vmatpush3.msra.mxu1 %v1202_v27  ;;  %v880_v46 = vrot.slane %v867_v29, %v1915_v50 }
 0x21c   :  { %1512 = vmatpush3.msra.mxu0 %v1182_v47  ;;  %1670 = vmatprep.subr.mxu1 %v1828_v0 }
 0x21d   :  { %1513 = vmatprep.subr.mxu0 %v1197_v49  ;;  %1671 = vmatpush3.msra.mxu1 %v1201_v28 }
 0x21e   :  { %1514 = vmatpush3.msra.mxu0 %v1181_v51 }
 0x21f   :  { %1515 = vmatprep.subr.mxu0 %v1196_v54 }
 0x220   :  { %1516 = vmatpush3.msra.mxu0 %v1180_v55 }
 0x221   :  { %1517 = vmatprep.subr.mxu0 %v1195_v39 }
 0x222   :  { %1518 = vmatpush3.msra.mxu0 %v1179_v42  ;;  %v1397_v42 = vld [vmem:[%s2036_s8] ss:$0 sm:$0xff]  ;;  %s1791_s8 = scalar_lea.vmem %s1385_s18, 128 }
 0x223   :  { %1519 = vmatprep.subr.mxu0 %v1194_v56  ;;  %v1365_v56 = vand.u32 127, %v114_v48  ;;  %p1792_p11 = scmp.ne.s32.totalorder %s1385_s18, %s1791_s8  ;;  %p1797_p13 = scmp.lt.s32.totalorder %s1791_s8, %s1791_s8 }
 0x224   :  { %1520 = vmatpush3.msra.mxu0 %v1178_v57 }
 0x225   :  { %1521 = vmatprep.subr.mxu0 %v1193_v59  ;;  %vm1366_vm2 = vcmp.lt.s32.totalorder %v1365_v56, 10  ;;  %p1798_p0 = por %p1797_p13, %p1796_p12 }
 0x226   :  { %1522 = vmatpush3.msra.mxu0 %v1177_v61 }
 0x227   :  { %1523 = vmatprep.subr.mxu0 %v1192_v63  ;;  %p1799_p1 = pnand %p1798_p0, %p1792_p11 }
 0x228   :  { %1524 = vmatpush3.msra.mxu0 %v1176_v60 }
 0x229   :  { %1525 = vmatprep.subr.mxu0 %v1191_v1 }
 0x22a   :  { %1526 = vmatpush3.msra.mxu0 %v1175_v2 }
 0x22b   :  { %1527 = vmatprep.subr.mxu0 %v1190_v3 }
 0x22c   :  { %1528 = vmatpush3.msra.mxu0 %v1174_v4 }
 0x22d   :  { %1529 = vmatprep.subr.mxu0 %v1189_v5 }
 0x22e   :  { %1530 = vmatpush3.msra.mxu0 %v1173_v6 }
 0x22f   :  { %1531 = vmatprep.subr.mxu0 %v1188_v7 }
 0x230   :  { %1532 = vmatpush3.msra.mxu0 %v1172_v58 }
 0x231   :  { %1533 = vmatprep.subr.mxu0 %v1187_v62 }
 0x232   :  { %1534 = vmatpush3.msra.mxu0 %v1171_v8 }
 0x233   :  { %1535 = vmatprep.subr.mxu0 %v1186_v9 }
 0x234   :  { %1536 = vmatpush3.msra.mxu0 %v1170_v10 }
 0x235   :  { %1537 = vmatprep.subr.mxu0 %v1185_v11 }
 0x236   :  { %1538 = vmatpush3.msra.mxu0 %v1169_v12 }
 0x29a   :  { %v950_v30 = vpop.f32.mrf.mxu1 }
 0x29b   :  { %v951_v34 = vadd.f32 %v950_v30, %v872_v31 }
 0x29c   :  { %v952_v33 = vpop.f32.mrf.mxu1 }
 0x29d   :  { %v953_v36 = vadd.f32 %v952_v33, %v876_v32 }
 0x2b7   :  { %v1021_v35 = vpop.f32.mrf.mxu0 }
 0x2b8   :  { %v1022_v37 = vadd.f32 %v1021_v35, %v951_v34 }
 0x2b9   :  { %v1023_v38 = vpop.f32.mrf.mxu0 }
 0x2ba   :  { %v1024_v40 = vadd.f32 %v1023_v38, %v953_v36  ;;  %v1166_v0 = vmax.f32 %v1022_v37, 0.0 }
 0x2bb   :  { %v1162_v43 = vpop.f32.mrf.mxu1 }
 0x2bc   :  { %v1167_v41 = vmax.f32 %v1024_v40, 0.0 }
 0x2bd   :  { %v1639_v44 = vpop.f32.mrf.mxu1 }
 0x2be   :  { %1288 = vmatprep.mubr.f32.mxu0 %v1167_v41 }
 0x2bf   :  { %1289 = vmatmul.mubr.f32.vlgmr.msra.gmra.mxu0 %v1166_v0 }
 0x2d7   :  { %v1487_v45 = vpop.f32.mrf.mxu0 }
 0x2d9   :  { %v1488_v47 = vpop.f32.mrf.mxu0 }
 0x2da   :  { %v1489_v52 = vadd.f32 %v1488_v47, %v1487_v45 }
 0x2dc   :  { %v1093_v49 = vadd.f32 %v1489_v52, %v880_v46 }
 0x2de   :  { %v1163_v53 = vadd.f32 %v1162_v43, %v1093_v49 }
 0x2e0   :  { %v1168_v51 = vmax.f32 %v1163_v53, 0.0 }
 0x2e2   :  { %1673 = vmatmul.mubr.f32.vlgmr.msra.gmra.mxu1 %v1168_v51 }
 0x37f   :  { %v1539_v54 = vpop.f32.mrf.mxu0 }
 0x381   :  { %v1540_v55 = vpop.f32.mrf.mxu0 }
 0x382   :  { %v1541_v39 = vadd.f32 %v1540_v55, %v1539_v54 }
 0x384   :  { %v1291_v57 = vadd.f32 %v1541_v39, %v1397_v42 }
 0x3a2   :  { %v1360_v59 = vpop.f32.mrf.mxu1 }
 0x3a3   :  { %v1361_v61 = vadd.f32 %v1360_v59, %v1291_v57 }
 0x3a4   :  { %v1674_v50 = vpop.f32.mrf.mxu1 }
 0x3a5   :  { %v1367_v63 = vsel %vm1366_vm2, %v1361_v61, -1e+30 }
 0x3a6   :  { %1368 = vmax.xlane.f32.xlu0 %v1367_v63 }
 0x42f   :  { %v1369_v60 = vpop.xlane.xlu0 %1368 }
 0x430   :  { %v1370_v1 = vsub.f32 %v1367_v63, %v1369_v60 }
 0x432   :  { %v1371_v2 = vmul.f32 1.442695, %v1370_v1 }
 0x434   :  { %1687 = vpow2.f32 %v1371_v2 }
 0x441   :  { %v1688_v3 = vpop.eup %1687 }
 0x442   :  { %1373 = vadd.xlane.f32.xlu0 %v1688_v3 }
 0x4cb   :  { %v1374_v4 = vpop.xlane.xlu0 %1373 }
 0x4cc   :  { %1689 = vrcp.f32 %v1374_v4 }
 0x4d9   :  { %v1690_v5 = vpop.eup %1689 }
 0x4da   :  { %v1376_v6 = vmul.f32 %v1690_v5, %v1688_v3 }
 0x4dc   :  { %1377 = vst [vmem:[#allocation11] sm:$0xff] %v1376_v6 }
 0x4dd   :  { %1802 = shalt.err (!%p1799_p1)
}
 0x4de   :  { %1387 = dma.vmem_to_hbm [thread:$0]  %s1385_s18, 128, %s2037_s9, [#allocation4]  }
 0x4df   :  { %1817 = dma.done.wait [#allocation4], 128  }
 0x4e0   :  { %1818 = vsyncadd [#allocation4], 4294967168 }
 0x4e1   :  { %1391 = vsyncpa [#allocation3], 1 }
 0x4e2   :  { %1392 = vsyncpa [#allocation6], 1 }
 0x4e3   :  { %1393 = vsyncpa [#allocation9], 1 }
 0x4e4   :  { %1394 = vsyncpa [#allocation4], 1 }

</bundles_post_ra>
